<compile_context>
chip_gen: v6e
topology: v6e:2x2x1
jax: 0.10.0
libtpu: 0.0.40
codegen_flags: <defaults>
</compile_context>

<pallas_src>
import functools

import jax
import jax.numpy as jnp
from jax import lax
from jax.experimental import pallas as pl
from jax.experimental.pallas import tpu as pltpu


def _round_up(x, m):
    return (x + m - 1) // m * m


def _device_kind():
    try:
        return jax.devices()[0].device_kind.lower()
    except Exception:
        return ""


def _is_v7x():
    k = _device_kind()
    return ("v7" in k) or ("tpu7" in k)


def _vmem_budget_bytes():
    # v7x: 64 MiB physical VMEM per core -> keep the working set near ~44 MiB.
    # v5e/v6e: 128 MiB physical -> ~88 MiB leaves double-buffering headroom.
    return (44 if _is_v7x() else 88) * 1024 * 1024


def _choose_time_chunk(T, Bc, Ep, Hp, budget_bytes):
    """Largest time chunk tt (a divisor of T, <= 256) whose working set fits."""
    # double-buffered fused weights + bias, h0/c0/h1/c1 blocks, h/c carries
    fixed = 2 * (Ep * 4 * Hp * 2 + Hp * 4 * Hp * 2 + 4 * Hp * 4)
    fixed += 4 * (2 * Bc * Hp * 4) + 2 * Bc * Hp * 4
    # per timestep: emb (dbl-buf bf16) + x out (dbl-buf bf16) + xp (bf16)
    # + f32 temp of the hoisted input projection
    per_t = Bc * (2 * Ep * 2 + 2 * Hp * 2 + 4 * Hp * 2 + 4 * Hp * 4)
    avail = budget_bytes - fixed
    max_tt = max(1, avail // per_t)
    max_tt = int(min(max_tt, 256, T))
    for tt in range(max_tt, 0, -1):
        if T % tt == 0:
            return tt
    return 1


def _choose_vocab_tile(v_pad, Hp, Mt, budget_bytes):
    """Vocab tile width; full vocab (w_proj fully resident) when it fits."""
    def fits(vt):
        wp = 2 * Hp * vt * 2          # w_proj tile (double-buffered)
        out = 2 * Mt * vt * 4         # f32 logit tile (double-buffered)
        ht = 2 * Mt * Hp * 2          # h_tilde tile (double-buffered)
        return wp + out + ht + 2 * vt * 4 <= (budget_bytes * 3) // 4
    if fits(v_pad):
        return v_pad
    for cand in (4096, 2048, 1024, 512, 256, 128):
        if v_pad % cand == 0 and fits(cand):
            return cand
    return 128


# ----------------------------------------------------------------------------
# Kernel A: single-layer batch_first LSTM (PyTorch gate order i, f, g, o)
# ----------------------------------------------------------------------------
def _lstm_kernel(emb_ref, wih_ref, whh_ref, bias_ref, h0_ref, c0_ref,
                 x_ref, h1_ref, c1_ref,
                 xp_ref, h_s, c_s):
    # emb_ref : (1, tt*Bc, Ep) bf16   time-major chunk of one batch chunk
    # wih_ref : (Ep, 4*Hp)     bf16   fused input weights   (gate order i,f,g,o)
    # whh_ref : (Hp, 4*Hp)     bf16   fused recurrent weights
    # bias_ref: (1, 4*Hp)      f32    b_ih + b_hh
    # x_ref   : (1, tt*Bc, Hp) bf16   LSTM outputs for this chunk
    # xp_ref  : (tt*Bc, 4*Hp)  bf16   hoisted input projection (scratch)
    # h_s/c_s : (Bc, Hp)       f32    carried hidden / cell state (scratch)
    Bc, Hp = h_s.shape
    tt = x_ref.shape[1] // Bc
    t_id = pl.program_id(1)

    @pl.when(t_id == 0)
    def _():
        h_s[...] = h0_ref[0]
        c_s[...] = c0_ref[0]

    # Hoisted, fused input projection (+ bias) for the whole chunk: a single
    # (tt*Bc, Ep) @ (Ep, 4Hp) matmul; stored bf16 (gate sum re-accumulated in f32).
    xp_ref[...] = (jnp.dot(emb_ref[0], wih_ref[...],
                           preferred_element_type=jnp.float32)
                   + bias_ref[...]).astype(jnp.bfloat16)

    def step(t, carry):
        h, c = carry                                             # (Bc, Hp) f32
        hb = h.astype(jnp.bfloat16)
        row = t * Bc
        if not isinstance(row, int):                             # fori_loop path
            row = pl.multiple_of(row, Bc)                        # sublane-aligned slice
        # ONE fused (Bc, Hp) @ (Hp, 4Hp) recurrent matmul per step.
        gates = (xp_ref[pl.ds(row, Bc), :].astype(jnp.float32)
                 + jnp.dot(hb, whh_ref[...],
                           preferred_element_type=jnp.float32))  # (Bc, 4Hp) f32
        i_t = jax.nn.sigmoid(gates[:, 0 * Hp:1 * Hp])
        f_t = jax.nn.sigmoid(gates[:, 1 * Hp:2 * Hp])
        g_t = jnp.tanh(gates[:, 2 * Hp:3 * Hp])
        o_t = jax.nn.sigmoid(gates[:, 3 * Hp:4 * Hp])
        c_new = f_t * c + i_t * g_t
        h_new = o_t * jnp.tanh(c_new)
        x_ref[0, pl.ds(row, Bc), :] = h_new.astype(x_ref.dtype)
        return h_new, c_new

    init = (h_s[...], c_s[...])
    if tt <= 8:
        # Short chunks: trace-time unroll (small enough to avoid vreg spills).
        h, c = init
        for t in range(tt):
            h, c = step(t, (h, c))
    else:
        h, c = lax.fori_loop(0, tt, step, init)

    h_s[...] = h
    c_s[...] = c

    # Resident h1/c1 output blocks: store only once, on the final time chunk.
    @pl.when(t_id == pl.num_programs(1) - 1)
    def _():
        h1_ref[0] = h
        c1_ref[0] = c


def lstm_forward(emb, w_ih, w_hh, bias, h0, c0, seq_len):
    """emb: (nb, T*Bc, Ep) bf16 time-major per batch chunk; w_ih: (Ep,4Hp) bf16;
       w_hh: (Hp,4Hp) bf16; bias: (1,4Hp) f32; h0/c0: (nb,Bc,Hp) f32.
       Returns x (nb, T*Bc, Hp) bf16, h1 (nb,Bc,Hp) f32, c1 (nb,Bc,Hp) f32."""
    nb, TBc, Ep = emb.shape
    T = seq_len
    Bc = TBc // T
    Hp = h0.shape[2]
    budget = _vmem_budget_bytes()
    tt = _choose_time_chunk(T, Bc, Ep, Hp, budget)
    nt = T // tt

    # NOTE: pipeline_mode=pl.Buffered(1) on the three invariant weight specs would
    # halve their VMEM footprint; omitted here for portability — the VMEM budget
    # above already accounts for the default double-buffered copies.
    return pl.pallas_call(
        _lstm_kernel,
        out_shape=(
            jax.ShapeDtypeStruct((nb, T * Bc, Hp), jnp.bfloat16),
            jax.ShapeDtypeStruct((nb, Bc, Hp), jnp.float32),
            jax.ShapeDtypeStruct((nb, Bc, Hp), jnp.float32),
        ),
        grid_spec=pltpu.PrefetchScalarGridSpec(
            num_scalar_prefetch=0,
            grid=(nb, nt),
            in_specs=[
                pl.BlockSpec((1, tt * Bc, Ep), lambda b, t: (b, t, 0)),   # embeds
                pl.BlockSpec((Ep, 4 * Hp), lambda b, t: (0, 0)),          # W_ih fused
                pl.BlockSpec((Hp, 4 * Hp), lambda b, t: (0, 0)),          # W_hh fused
                pl.BlockSpec((1, 4 * Hp), lambda b, t: (0, 0)),           # bias
                pl.BlockSpec((1, Bc, Hp), lambda b, t: (b, 0, 0)),        # h0 chunk
                pl.BlockSpec((1, Bc, Hp), lambda b, t: (b, 0, 0)),        # c0 chunk
            ],
            out_specs=[
                pl.BlockSpec((1, tt * Bc, Hp), lambda b, t: (b, t, 0)),   # x chunk
                pl.BlockSpec((1, Bc, Hp), lambda b, t: (b, 0, 0)),        # h1 resident
                pl.BlockSpec((1, Bc, Hp), lambda b, t: (b, 0, 0)),        # c1 resident
            ],
            scratch_shapes=[
                pltpu.VMEM((tt * Bc, 4 * Hp), jnp.bfloat16),    # hoisted input proj
                pltpu.VMEM((Bc, Hp), jnp.float32),              # h carry
                pltpu.VMEM((Bc, Hp), jnp.float32),              # c carry
            ],
        ),
        compiler_params=pltpu.CompilerParams(
            dimension_semantics=("parallel", "arbitrary"),      # batch-chunks || time
            vmem_limit_bytes=budget),
    )(emb, w_ih, w_hh, bias, h0, c0)


# ----------------------------------------------------------------------------
# Kernel B1: SoftDotAttention h_tilde branch (per batch row)
# ----------------------------------------------------------------------------
def _attn_kernel(x_ref, ctx_ref, mask_ref, win_ref, woutc_ref, wouth_ref, ht_ref):
    # x_ref   : (1, T, Hp)  bf16   LSTM outputs for this batch row
    # ctx_ref : (1, Sp, Hp) bf16
    # mask_ref: (1, 1, Sp)  f32    1.0 => masked (padding positions are masked)
    # ht_ref  : (1, T, Hp)  bf16   h_tilde output
    x = x_ref[0]                                                 # (T, Hp)
    ctx = ctx_ref[0]                                             # (Sp, Hp)
    mask = mask_ref[0]                                           # (1, Sp)

    # target = linear_in(h)
    target = jnp.dot(x, win_ref[...],
                     preferred_element_type=jnp.float32)         # (T, Hp) f32
    # attn = target @ ctx^T : contract Hp against Hp (no ctx transpose)
    attn = lax.dot_general(
        target.astype(jnp.bfloat16), ctx,
        dimension_numbers=(((1,), (1,)), ((), ())),
        preferred_element_type=jnp.float32)                      # (T, Sp)
    attn = jnp.where(mask > 0.0, -1e30, attn)                    # -1e30 stands in for -inf

    # softmax over seq_len (max-subtracted, EUP reciprocal)
    attn = attn - jnp.max(attn, axis=-1, keepdims=True)
    e = jnp.exp(attn)
    p = e * pl.reciprocal(jnp.sum(e, axis=-1, keepdims=True), approx=True)

    # weighted_context = attn @ ctx
    wc = jnp.dot(p.astype(jnp.bfloat16), ctx,
                 preferred_element_type=jnp.float32)             # (T, Hp)

    # h_tilde = tanh(linear_out(cat(weighted_context, h))) — two matmuls, one f32 add
    h_tilde = jnp.tanh(
        jnp.dot(wc.astype(jnp.bfloat16), woutc_ref[...],
                preferred_element_type=jnp.float32)
        + jnp.dot(x, wouth_ref[...],
                  preferred_element_type=jnp.float32))           # (T, Hp)
    ht_ref[0] = h_tilde.astype(ht_ref.dtype)


def attention_htilde(x_bth, ctx, mask3, w_in, w_out_c, w_out_h):
    """x_bth: (B,T,Hp) bf16; ctx: (B,Sp,Hp) bf16; mask3: (B,1,Sp) f32.
       Returns h_tilde (B,T,Hp) bf16."""
    B, T, Hp = x_bth.shape
    Sp = ctx.shape[1]
    budget = _vmem_budget_bytes()
    return pl.pallas_call(
        _attn_kernel,
        out_shape=jax.ShapeDtypeStruct((B, T, Hp), jnp.bfloat16),
        grid_spec=pltpu.PrefetchScalarGridSpec(
            num_scalar_prefetch=0,
            grid=(B,),
            in_specs=[
                pl.BlockSpec((1, T, Hp), lambda b: (b, 0, 0)),    # x
                pl.BlockSpec((1, Sp, Hp), lambda b: (b, 0, 0)),   # ctx
                pl.BlockSpec((1, 1, Sp), lambda b: (b, 0, 0)),    # mask
                pl.BlockSpec((Hp, Hp), lambda b: (0, 0)),         # linear_in^T
                pl.BlockSpec((Hp, Hp), lambda b: (0, 0)),         # linear_out^T (wc half)
                pl.BlockSpec((Hp, Hp), lambda b: (0, 0)),         # linear_out^T (h half)
            ],
            out_specs=pl.BlockSpec((1, T, Hp), lambda b: (b, 0, 0)),
        ),
        compiler_params=pltpu.CompilerParams(
            dimension_semantics=("parallel",),
            vmem_limit_bytes=budget),
    )(x_bth, ctx, mask3, w_in, w_out_c, w_out_h)


# ----------------------------------------------------------------------------
# Kernel B2: vocab projection over flattened B*T rows (vocab-outer grid)
# ----------------------------------------------------------------------------
def _proj_kernel(ht_ref, wproj_ref, bproj_ref, logit_ref):
    # ht_ref   : (Mt, Hp) bf16 ; wproj_ref: (Hp, vt) bf16 ; bproj_ref: (1, vt) f32
    # logit_ref: (Mt, vt) f32  (kept f32 for parity with the PyTorch reference;
    #                           bf16 store would halve writeback traffic if tolerated)
    logit_ref[...] = (jnp.dot(ht_ref[...], wproj_ref[...],
                              preferred_element_type=jnp.float32)
                      + bproj_ref[...])


def vocab_projection(ht_flat, w_proj, b_proj):
    """ht_flat: (B*T, Hp) bf16; w_proj: (Hp, Vpad) bf16; b_proj: (1, Vpad) f32.
       Returns logits (BTpad, Vpad) f32."""
    BT, Hp = ht_flat.shape
    Vp = w_proj.shape[1]
    budget = _vmem_budget_bytes()

    Mt = 256 if BT >= 256 else _round_up(BT, 8)
    BTp = _round_up(BT, Mt)
    if BTp != BT:
        ht_flat = jnp.pad(ht_flat, ((0, BTp - BT), (0, 0)))
    nm = BTp // Mt

    vt = _choose_vocab_tile(Vp, Hp, Mt, budget)
    nv = Vp // vt

    return pl.pallas_call(
        _proj_kernel,
        out_shape=jax.ShapeDtypeStruct((BTp, Vp), jnp.float32),
        grid_spec=pltpu.PrefetchScalarGridSpec(
            num_scalar_prefetch=0,
            grid=(nv, nm),                                     # vocab OUTER -> each
            in_specs=[                                         # w_proj tile fetched once
                pl.BlockSpec((Mt, Hp), lambda v, m: (m, 0)),
                pl.BlockSpec((Hp, vt), lambda v, m: (0, v)),
                pl.BlockSpec((1, vt), lambda v, m: (0, v)),
            ],
            out_specs=pl.BlockSpec((Mt, vt), lambda v, m: (m, v)),
        ),
        compiler_params=pltpu.CompilerParams(
            dimension_semantics=("parallel", "parallel"),
            vmem_limit_bytes=budget),
    )(ht_flat, w_proj, b_proj)


# ----------------------------------------------------------------------------
# SpeakerDecoder params + forward (glue: gather, padding, reshapes)
# ----------------------------------------------------------------------------
class SpeakerDecoderParams:
    def __init__(self, key, vocab_size, embedding_size, padding_idx, hidden_size):
        ks = jax.random.split(key, 9)
        H, E, V = hidden_size, embedding_size, vocab_size
        scale = 0.1
        emb = scale * jax.random.normal(ks[0], (V, E), jnp.float32)
        self.embedding = emb.at[padding_idx].set(0.0)       # padding_idx row = 0
        # Fused LSTM weights in PyTorch gate order (i, f, g, o) along the 4H axis:
        #   w_ih == weight_ih_l0.T laid out (E, 4H); w_hh == weight_hh_l0.T (H, 4H);
        #   bias == (bias_ih_l0 + bias_hh_l0) as (1, 4H).
        self.w_ih = scale * jax.random.normal(ks[1], (E, 4 * H), jnp.float32)
        self.w_hh = scale * jax.random.normal(ks[2], (H, 4 * H), jnp.float32)
        self.bias = scale * jax.random.normal(ks[3], (1, 4 * H), jnp.float32)
        self.w_in = scale * jax.random.normal(ks[4], (H, H), jnp.float32)   # linear_in^T
        # linear_out^T split into the weighted_context half and the h half
        # (PyTorch concatenates (weighted_context, h) before linear_out).
        self.w_out_c = scale * jax.random.normal(ks[5], (H, H), jnp.float32)
        self.w_out_h = scale * jax.random.normal(ks[6], (H, H), jnp.float32)
        self.w_proj = scale * jax.random.normal(ks[7], (H, V), jnp.float32)  # projection^T
        self.b_proj = scale * jax.random.normal(ks[8], (1, V), jnp.float32)
        self.hidden_size = H
        self.embedding_size = E
        self.vocab_size = V
        # TODO(synk): baseline_projection head is defined in __init__ but unused in forward.


def speaker_decoder_forward(params, words, ctx, ctx_mask, h0, c0):
    """words: (B,T) int32; ctx: (B,S,H); ctx_mask: (B,S) bool; h0/c0: (1,B,H).
       Returns (logit (B,T,V), h1 (1,B,H), c1 (1,B,H)). Dropout = identity (eval)."""
    B, T = words.shape
    H = params.hidden_size
    E = params.embedding_size
    V = params.vocab_size
    S = ctx.shape[1]

    # lane-dense padding of all feature dims
    Hp = _round_up(H, 128)
    Ep = _round_up(E, 128)
    Sp = _round_up(S, 128)
    Vp = _round_up(V, 128)

    # v7x has 2 TensorCores: split the (independent-per-row) recurrence into 2
    # batch chunks sharded across cores; single chunk elsewhere.
    nb = 2 if (_is_v7x() and B > 8) else 1
    Bp = _round_up(B, 8 * nb)
    Bc = Bp // nb

    # ---- Kernel A inputs: time-major embedding gather, padded & batch-chunked ----
    emb_tbl = jnp.pad(params.embedding, ((0, 0), (0, Ep - E)))
    embeds = emb_tbl[words.T]                                    # (T, B, Ep)
    embeds = jnp.pad(embeds, ((0, 0), (0, Bp - B), (0, 0))).astype(jnp.bfloat16)
    emb = (embeds.reshape(T, nb, Bc, Ep)
                 .transpose(1, 0, 2, 3)
                 .reshape(nb, T * Bc, Ep))                       # (nb, T*Bc, Ep)

    w_ih = jnp.pad(params.w_ih.reshape(E, 4, H),
                   ((0, Ep - E), (0, 0), (0, Hp - H))
                   ).reshape(Ep, 4 * Hp).astype(jnp.bfloat16)
    w_hh = jnp.pad(params.w_hh.reshape(H, 4, H),
                   ((0, Hp - H), (0, 0), (0, Hp - H))
                   ).reshape(Hp, 4 * Hp).astype(jnp.bfloat16)
    bias = jnp.pad(params.bias.reshape(4, H),
                   ((0, 0), (0, Hp - H))).reshape(1, 4 * Hp)     # f32

    def pad_state(s):                                            # (1,B,H) -> (nb,Bc,Hp)
        s = jnp.pad(s[0], ((0, Bp - B), (0, Hp - H)))
        return s.reshape(nb, Bc, Hp)

    x, h1, c1 = lstm_forward(emb, w_ih, w_hh, bias,
                             pad_state(h0), pad_state(c0), T)    # x: (nb, T*Bc, Hp)

    # batch-major relayout of the small bf16 hidden activations
    x_bth = (x.reshape(nb, T, Bc, Hp)
              .transpose(0, 2, 1, 3)
              .reshape(Bp, T, Hp))[:B]                           # (B, T, Hp)

    h1 = h1.reshape(Bp, Hp)[:B, :H][None]                        # (1, B, H)
    c1 = c1.reshape(Bp, Hp)[:B, :H][None]

    # ---- Kernel B1: attention h_tilde (per batch row; S padded, padding masked) ----
    ctx_p = jnp.pad(ctx, ((0, 0), (0, Sp - S), (0, Hp - H))).astype(jnp.bfloat16)
    mask3 = jnp.pad(ctx_mask.astype(jnp.float32),
                    ((0, 0), (0, Sp - S)), constant_values=1.0).reshape(B, 1, Sp)
    w_in = jnp.pad(params.w_in, ((0, Hp - H), (0, Hp - H))).astype(jnp.bfloat16)
    w_out_c = jnp.pad(params.w_out_c, ((0, Hp - H), (0, Hp - H))).astype(jnp.bfloat16)
    w_out_h = jnp.pad(params.w_out_h, ((0, Hp - H), (0, Hp - H))).astype(jnp.bfloat16)
    h_tilde = attention_htilde(x_bth, ctx_p, mask3, w_in, w_out_c, w_out_h)  # (B,T,Hp)

    # ---- Kernel B2: vocab projection over flattened B*T rows ----
    w_proj = jnp.pad(params.w_proj, ((0, Hp - H), (0, Vp - V))).astype(jnp.bfloat16)
    b_proj = jnp.pad(params.b_proj, ((0, 0), (0, Vp - V)))
    logit = vocab_projection(h_tilde.reshape(B * T, Hp), w_proj, b_proj)
    logit = logit[:B * T, :V].reshape(B, T, V)
    return logit, h1, c1


if __name__ == "__main__":
    # small shapes consistent with the module
    B, T, S = 2, 8, 6
    vocab_size, embedding_size, hidden_size, padding_idx = 40, 24, 32, 0

    key = jax.random.PRNGKey(0)
    k_par, k_words, k_ctx, k_h, k_c = jax.random.split(key, 5)

    params = SpeakerDecoderParams(k_par, vocab_size, embedding_size,
                                  padding_idx, hidden_size)

    words = jax.random.randint(k_words, (B, T), 0, vocab_size, dtype=jnp.int32)
    ctx = jax.random.normal(k_ctx, (B, S, hidden_size), jnp.float32)
    # mask last two context positions of batch row 1 (bool, True = masked)
    ctx_mask = jnp.zeros((B, S), jnp.bool_).at[1, S - 2:].set(True)
    h0 = jax.random.normal(k_h, (1, B, hidden_size), jnp.float32)
    c0 = jax.random.normal(k_c, (1, B, hidden_size), jnp.float32)

    fwd = jax.jit(functools.partial(speaker_decoder_forward, params))
    logit, h1, c1 = fwd(words, ctx, ctx_mask, h0, c0)
    jax.block_until_ready((logit, h1, c1))

    assert logit.shape == (B, T, vocab_size)
    assert h1.shape == (1, B, hidden_size) and c1.shape == (1, B, hidden_size)
    assert bool(jnp.all(jnp.isfinite(logit)))
    assert bool(jnp.all(jnp.isfinite(h1))) and bool(jnp.all(jnp.isfinite(c1)))
    print("KERNEL_OK")
</pallas_src>

<mosaic_0001>
module attributes {stable_mosaic.version = 11 : i64} {
  func.func @_proj_kernel(%arg0: i32, %arg1: i32, %arg2: memref<16x128xbf16, #tpu.memory_space<vmem>>, %arg3: memref<128x128xbf16, #tpu.memory_space<vmem>>, %arg4: memref<1x128xf32, #tpu.memory_space<vmem>>, %arg5: memref<16x128xf32, #tpu.memory_space<vmem>>) attributes {dimension_semantics = [#tpu.dimension_semantics<parallel>, #tpu.dimension_semantics<parallel>], iteration_bounds = array<i64: 1, 1>, scalar_prefetch = 0 : i64, scratch_operands = 0 : i64, tpu.core_type = #tpu.core_type<tc>, window_params = [{transform_indices = @transform_0, window_bounds = array<i64: 16, 128>}, {transform_indices = @transform_1, window_bounds = array<i64: 128, 128>}, {transform_indices = @transform_2, window_bounds = array<i64: 1, 128>}, {transform_indices = @transform_3, window_bounds = array<i64: 16, 128>}]} {
    %c0 = arith.constant 0 : index
    %c0_0 = arith.constant 0 : index
    %0 = vector.load %arg2[%c0, %c0_0] : memref<16x128xbf16, #tpu.memory_space<vmem>>, vector<16x128xbf16>
    %c0_1 = arith.constant 0 : index
    %c0_2 = arith.constant 0 : index
    %1 = vector.load %arg3[%c0_1, %c0_2] : memref<128x128xbf16, #tpu.memory_space<vmem>>, vector<128x128xbf16>
    %cst = arith.constant dense<0.000000e+00> : vector<16x128xf32>
    %2 = tpu.matmul %0, %1, %cst {dimension_numbers = #tpu.dot_dimension_numbers<[1], [0], [0], [1], [0, 0, 1, 1], [], []>} : vector<16x128xbf16>, vector<128x128xbf16>, vector<16x128xf32> -> vector<16x128xf32>
    %c0_3 = arith.constant 0 : index
    %c0_4 = arith.constant 0 : index
    %3 = vector.load %arg4[%c0_3, %c0_4] : memref<1x128xf32, #tpu.memory_space<vmem>>, vector<1x128xf32>
    %4 = vector.broadcast %3 : vector<1x128xf32> to vector<16x128xf32>
    %5 = arith.addf %2, %4 : vector<16x128xf32>
    %c0_5 = arith.constant 0 : index
    %c0_6 = arith.constant 0 : index
    %6 = vector.load %arg5[%c0_5, %c0_6] : memref<16x128xf32, #tpu.memory_space<vmem>>, vector<16x128xf32>
    tpu.vector_store %arg5[%c0_5, %c0_6], %5 {strides = array<i32>} : memref<16x128xf32, #tpu.memory_space<vmem>>, vector<16x128xf32>,
    return
  }
  func.func @transform_0(%arg0: i32, %arg1: i32) -> (i32, i32) {
    %c0_i32 = arith.constant 0 : i32
    %c0_i32_0 = arith.constant 0 : i32
    return %arg1, %c0_i32 : i32, i32
  }
  func.func @transform_1(%arg0: i32, %arg1: i32) -> (i32, i32) {
    %c0_i32 = arith.constant 0 : i32
    %c0_i32_0 = arith.constant 0 : i32
    return %c0_i32, %arg0 : i32, i32
  }
  func.func @transform_2(%arg0: i32, %arg1: i32) -> (i32, i32) {
    %c0_i32 = arith.constant 0 : i32
    %c0_i32_0 = arith.constant 0 : i32
    return %c0_i32, %arg0 : i32, i32
  }
  func.func @transform_3(%arg0: i32, %arg1: i32) -> (i32, i32) {
    %c0_i32 = arith.constant 0 : i32
    return %arg1, %arg0 : i32, i32
  }
}

module attributes {stable_mosaic.version = 11 : i64} {
  func.func @_attn_kernel(%arg0: i32, %arg1: memref<1x8x128xbf16, #tpu.memory_space<vmem>>, %arg2: memref<1x128x128xbf16, #tpu.memory_space<vmem>>, %arg3: memref<1x1x128xf32, #tpu.memory_space<vmem>>, %arg4: memref<128x128xbf16, #tpu.memory_space<vmem>>, %arg5: memref<128x128xbf16, #tpu.memory_space<vmem>>, %arg6: memref<128x128xbf16, #tpu.memory_space<vmem>>, %arg7: memref<1x8x128xbf16, #tpu.memory_space<vmem>>) attributes {dimension_semantics = [#tpu.dimension_semantics<parallel>], iteration_bounds = array<i64: 2>, scalar_prefetch = 0 : i64, scratch_operands = 0 : i64, tpu.core_type = #tpu.core_type<tc>, window_params = [{transform_indices = @transform_0, window_bounds = array<i64: 1, 8, 128>}, {transform_indices = @transform_1, window_bounds = array<i64: 1, 128, 128>}, {transform_indices = @transform_2, window_bounds = array<i64: 1, 1, 128>}, {pipeline_mode = #tpu.pipeline_mode<synchronous>, transform_indices = @transform_3, window_bounds = array<i64: 128, 128>}, {pipeline_mode = #tpu.pipeline_mode<synchronous>, transform_indices = @transform_4, window_bounds = array<i64: 128, 128>}, {pipeline_mode = #tpu.pipeline_mode<synchronous>, transform_indices = @transform_5, window_bounds = array<i64: 128, 128>}, {transform_indices = @transform_6, window_bounds = array<i64: 1, 8, 128>}]} {
    %c0 = arith.constant 0 : index
    %c0_0 = arith.constant 0 : index
    %c0_1 = arith.constant 0 : index
    %0 = vector.load %arg1[%c0, %c0_0, %c0_1] : memref<1x8x128xbf16, #tpu.memory_space<vmem>>, vector<1x8x128xbf16>
    %1 = vector.shape_cast %0 : vector<1x8x128xbf16> to vector<8x128xbf16>
    %c0_2 = arith.constant 0 : index
    %c0_3 = arith.constant 0 : index
    %c0_4 = arith.constant 0 : index
    %2 = vector.load %arg2[%c0_2, %c0_3, %c0_4] : memref<1x128x128xbf16, #tpu.memory_space<vmem>>, vector<1x128x128xbf16>
    %3 = vector.shape_cast %2 : vector<1x128x128xbf16> to vector<128x128xbf16>
    %c0_5 = arith.constant 0 : index
    %c0_6 = arith.constant 0 : index
    %c0_7 = arith.constant 0 : index
    %4 = vector.load %arg3[%c0_5, %c0_6, %c0_7] : memref<1x1x128xf32, #tpu.memory_space<vmem>>, vector<1x1x128xf32>
    %5 = vector.shape_cast %4 : vector<1x1x128xf32> to vector<1x128xf32>
    %c0_8 = arith.constant 0 : index
    %c0_9 = arith.constant 0 : index
    %6 = vector.load %arg4[%c0_8, %c0_9] : memref<128x128xbf16, #tpu.memory_space<vmem>>, vector<128x128xbf16>
    %cst = arith.constant dense<0.000000e+00> : vector<8x128xf32>
    %7 = tpu.matmul %1, %6, %cst {dimension_numbers = #tpu.dot_dimension_numbers<[1], [0], [0], [1], [0, 0, 1, 1], [], []>} : vector<8x128xbf16>, vector<128x128xbf16>, vector<8x128xf32> -> vector<8x128xf32>
    %8 = arith.truncf %7 : vector<8x128xf32> to vector<8x128xbf16>
    %cst_10 = arith.constant dense<0.000000e+00> : vector<8x128xf32>
    %9 = tpu.matmul %8, %3, %cst_10 {dimension_numbers = #tpu.dot_dimension_numbers<[1], [1], [0], [0], [0, 0, 1, 0], [], []>} : vector<8x128xbf16>, vector<128x128xbf16>, vector<8x128xf32> -> vector<8x128xf32>
    %cst_11 = arith.constant 0.000000e+00 : f32
    %10 = vector.broadcast %cst_11 : f32 to vector<1x128xf32>
    %11 = arith.cmpf ogt, %5, %10 : vector<1x128xf32>
    %cst_12 = arith.constant -1.000000e+30 : f32
    %12 = vector.shape_cast %11 : vector<1x128xi1> to vector<1x128xi1>
    %13 = vector.broadcast %12 : vector<1x128xi1> to vector<8x128xi1>
    %14 = vector.broadcast %cst_12 : f32 to vector<8x128xf32>
    %15 = arith.select %13, %14, %9 : vector<8x128xi1>, vector<8x128xf32>
    %cst_13 = arith.constant dense<0xFF800000> : vector<8xf32>
    %16 = vector.multi_reduction <maximumf>, %15, %cst_13 [1] : vector<8x128xf32> to vector<8xf32>
    %17 = vector.shape_cast %16 : vector<8xf32> to vector<8x1xf32>
    %18 = vector.broadcast %17 : vector<8x1xf32> to vector<8x128xf32>
    %19 = arith.subf %15, %18 : vector<8x128xf32>
    %20 = math.exp %19 : vector<8x128xf32>
    %cst_14 = arith.constant dense<0.000000e+00> : vector<8xf32>
    %21 = vector.multi_reduction <add>, %20, %cst_14 [1] : vector<8x128xf32> to vector<8xf32>
    %22 = vector.shape_cast %21 : vector<8xf32> to vector<8x1xf32>
    %23 = tpu.reciprocal %22 {approx = true} : vector<8x1xf32> -> vector<8x1xf32>
    %24 = vector.broadcast %23 : vector<8x1xf32> to vector<8x128xf32>
    %25 = arith.mulf %20, %24 : vector<8x128xf32>
    %26 = arith.truncf %25 : vector<8x128xf32> to vector<8x128xbf16>
    %cst_15 = arith.constant dense<0.000000e+00> : vector<8x128xf32>
    %27 = tpu.matmul %26, %3, %cst_15 {dimension_numbers = #tpu.dot_dimension_numbers<[1], [0], [0], [1], [0, 0, 1, 1], [], []>} : vector<8x128xbf16>, vector<128x128xbf16>, vector<8x128xf32> -> vector<8x128xf32>
    %28 = arith.truncf %27 : vector<8x128xf32> to vector<8x128xbf16>
    %c0_16 = arith.constant 0 : index
    %c0_17 = arith.constant 0 : index
    %29 = vector.load %arg5[%c0_16, %c0_17] : memref<128x128xbf16, #tpu.memory_space<vmem>>, vector<128x128xbf16>
    %cst_18 = arith.constant dense<0.000000e+00> : vector<8x128xf32>
    %30 = tpu.matmul %28, %29, %cst_18 {dimension_numbers = #tpu.dot_dimension_numbers<[1], [0], [0], [1], [0, 0, 1, 1], [], []>} : vector<8x128xbf16>, vector<128x128xbf16>, vector<8x128xf32> -> vector<8x128xf32>
    %c0_19 = arith.constant 0 : index
    %c0_20 = arith.constant 0 : index
    %31 = vector.load %arg6[%c0_19, %c0_20] : memref<128x128xbf16, #tpu.memory_space<vmem>>, vector<128x128xbf16>
    %cst_21 = arith.constant dense<0.000000e+00> : vector<8x128xf32>
    %32 = tpu.matmul %1, %31, %cst_21 {dimension_numbers = #tpu.dot_dimension_numbers<[1], [0], [0], [1], [0, 0, 1, 1], [], []>} : vector<8x128xbf16>, vector<128x128xbf16>, vector<8x128xf32> -> vector<8x128xf32>
    %33 = arith.addf %30, %32 : vector<8x128xf32>
    %34 = math.tanh %33 : vector<8x128xf32>
    %35 = arith.truncf %34 : vector<8x128xf32> to vector<8x128xbf16>
    %c0_22 = arith.constant 0 : index
    %c0_23 = arith.constant 0 : index
    %c0_24 = arith.constant 0 : index
    %36 = vector.load %arg7[%c0_22, %c0_23, %c0_24] : memref<1x8x128xbf16, #tpu.memory_space<vmem>>, vector<1x8x128xbf16>
    %37 = vector.shape_cast %36 : vector<1x8x128xbf16> to vector<8x128xbf16>
    %38 = vector.shape_cast %35 : vector<8x128xbf16> to vector<1x8x128xbf16>
    tpu.vector_store %arg7[%c0_22, %c0_23, %c0_24], %38 {strides = array<i32>} : memref<1x8x128xbf16, #tpu.memory_space<vmem>>, vector<1x8x128xbf16>,
    return
  }
  func.func @transform_0(%arg0: i32) -> (i32, i32, i32) {
    %c0_i32 = arith.constant 0 : i32
    %c0_i32_0 = arith.constant 0 : i32
    %c0_i32_1 = arith.constant 0 : i32
    return %arg0, %c0_i32, %c0_i32_0 : i32, i32, i32
  }
  func.func @transform_1(%arg0: i32) -> (i32, i32, i32) {
    %c0_i32 = arith.constant 0 : i32
    %c0_i32_0 = arith.constant 0 : i32
    %c0_i32_1 = arith.constant 0 : i32
    return %arg0, %c0_i32, %c0_i32_0 : i32, i32, i32
  }
  func.func @transform_2(%arg0: i32) -> (i32, i32, i32) {
    %c0_i32 = arith.constant 0 : i32
    %c0_i32_0 = arith.constant 0 : i32
    %c0_i32_1 = arith.constant 0 : i32
    return %arg0, %c0_i32, %c0_i32_0 : i32, i32, i32
  }
  func.func @transform_3(%arg0: i32) -> (i32, i32) {
    %c0_i32 = arith.constant 0 : i32
    %c0_i32_0 = arith.constant 0 : i32
    %c0_i32_1 = arith.constant 0 : i32
    return %c0_i32, %c0_i32_0 : i32, i32
  }
  func.func @transform_4(%arg0: i32) -> (i32, i32) {
    %c0_i32 = arith.constant 0 : i32
    %c0_i32_0 = arith.constant 0 : i32
    %c0_i32_1 = arith.constant 0 : i32
    return %c0_i32, %c0_i32_0 : i32, i32
  }
  func.func @transform_5(%arg0: i32) -> (i32, i32) {
    %c0_i32 = arith.constant 0 : i32
    %c0_i32_0 = arith.constant 0 : i32
    %c0_i32_1 = arith.constant 0 : i32
    return %c0_i32, %c0_i32_0 : i32, i32
  }
  func.func @transform_6(%arg0: i32) -> (i32, i32, i32) {
    %c0_i32 = arith.constant 0 : i32
    %c0_i32_0 = arith.constant 0 : i32
    %c0_i32_1 = arith.constant 0 : i32
    return %arg0, %c0_i32, %c0_i32_0 : i32, i32, i32
  }
}

module attributes {stable_mosaic.version = 11 : i64} {
  func.func @_lstm_kernel(%arg0: i32, %arg1: i32, %arg2: memref<1x64x128xbf16, #tpu.memory_space<vmem>>, %arg3: memref<128x512xbf16, #tpu.memory_space<vmem>>, %arg4: memref<128x512xbf16, #tpu.memory_space<vmem>>, %arg5: memref<1x512xf32, #tpu.memory_space<vmem>>, %arg6: memref<1x8x128xf32, #tpu.memory_space<vmem>>, %arg7: memref<1x8x128xf32, #tpu.memory_space<vmem>>, %arg8: memref<1x64x128xbf16, #tpu.memory_space<vmem>>, %arg9: memref<1x8x128xf32, #tpu.memory_space<vmem>>, %arg10: memref<1x8x128xf32, #tpu.memory_space<vmem>>, %arg11: memref<64x512xbf16, #tpu.memory_space<vmem>>, %arg12: memref<8x128xf32, #tpu.memory_space<vmem>>, %arg13: memref<8x128xf32, #tpu.memory_space<vmem>>) attributes {dimension_semantics = [#tpu.dimension_semantics<parallel>, #tpu.dimension_semantics<arbitrary>], iteration_bounds = array<i64: 1, 1>, scalar_prefetch = 0 : i64, scratch_operands = 3 : i64, tpu.core_type = #tpu.core_type<tc>, window_params = [{transform_indices = @transform_0, window_bounds = array<i64: 1, 64, 128>}, {pipeline_mode = #tpu.pipeline_mode<synchronous>, transform_indices = @transform_1, window_bounds = array<i64: 128, 512>}, {pipeline_mode = #tpu.pipeline_mode<synchronous>, transform_indices = @transform_2, window_bounds = array<i64: 128, 512>}, {pipeline_mode = #tpu.pipeline_mode<synchronous>, transform_indices = @transform_3, window_bounds = array<i64: 1, 512>}, {transform_indices = @transform_4, window_bounds = array<i64: 1, 8, 128>}, {transform_indices = @transform_5, window_bounds = array<i64: 1, 8, 128>}, {transform_indices = @transform_6, window_bounds = array<i64: 1, 64, 128>}, {transform_indices = @transform_7, window_bounds = array<i64: 1, 8, 128>}, {transform_indices = @transform_8, window_bounds = array<i64: 1, 8, 128>}]} {
    %c0_i32 = arith.constant 0 : i32
    %0 = arith.cmpi eq, %arg1, %c0_i32 : i32
    %1 = arith.extui %0 : i1 to i32
    %c0_i32_0 = arith.constant 0 : i32
    %2 = arith.cmpi ne, %1, %c0_i32_0 : i32
    scf.if %2 {
      %c0_100 = arith.constant 0 : index
      %c0_101 = arith.constant 0 : index
      %c0_102 = arith.constant 0 : index
      %299 = vector.load %arg6[%c0_100, %c0_101, %c0_102] : memref<1x8x128xf32, #tpu.memory_space<vmem>>, vector<1x8x128xf32>
      %300 = vector.shape_cast %299 : vector<1x8x128xf32> to vector<8x128xf32>
      %c0_103 = arith.constant 0 : index
      %c0_104 = arith.constant 0 : index
      %301 = vector.load %arg12[%c0_103, %c0_104] : memref<8x128xf32, #tpu.memory_space<vmem>>, vector<8x128xf32>
      tpu.vector_store %arg12[%c0_103, %c0_104], %300 {strides = array<i32>} : memref<8x128xf32, #tpu.memory_space<vmem>>, vector<8x128xf32>,
      %c0_105 = arith.constant 0 : index
      %c0_106 = arith.constant 0 : index
      %c0_107 = arith.constant 0 : index
      %302 = vector.load %arg7[%c0_105, %c0_106, %c0_107] : memref<1x8x128xf32, #tpu.memory_space<vmem>>, vector<1x8x128xf32>
      %303 = vector.shape_cast %302 : vector<1x8x128xf32> to vector<8x128xf32>
      %c0_108 = arith.constant 0 : index
      %c0_109 = arith.constant 0 : index
      %304 = vector.load %arg13[%c0_108, %c0_109] : memref<8x128xf32, #tpu.memory_space<vmem>>, vector<8x128xf32>
      tpu.vector_store %arg13[%c0_108, %c0_109], %303 {strides = array<i32>} : memref<8x128xf32, #tpu.memory_space<vmem>>, vector<8x128xf32>,
    } else {
    }
    %c0 = arith.constant 0 : index
    %c0_1 = arith.constant 0 : index
    %c0_2 = arith.constant 0 : index
    %3 = vector.load %arg2[%c0, %c0_1, %c0_2] : memref<1x64x128xbf16, #tpu.memory_space<vmem>>, vector<1x64x128xbf16>
    %4 = vector.shape_cast %3 : vector<1x64x128xbf16> to vector<64x128xbf16>
    %c0_3 = arith.constant 0 : index
    %c0_4 = arith.constant 0 : index
    %5 = vector.load %arg3[%c0_3, %c0_4] : memref<128x512xbf16, #tpu.memory_space<vmem>>, vector<128x512xbf16>
    %cst = arith.constant dense<0.000000e+00> : vector<64x512xf32>
    %6 = tpu.matmul %4, %5, %cst {dimension_numbers = #tpu.dot_dimension_numbers<[1], [0], [0], [1], [0, 0, 1, 1], [], []>} : vector<64x128xbf16>, vector<128x512xbf16>, vector<64x512xf32> -> vector<64x512xf32>
    %c0_5 = arith.constant 0 : index
    %c0_6 = arith.constant 0 : index
    %7 = vector.load %arg5[%c0_5, %c0_6] : memref<1x512xf32, #tpu.memory_space<vmem>>, vector<1x512xf32>
    %8 = vector.broadcast %7 : vector<1x512xf32> to vector<64x512xf32>
    %9 = arith.addf %6, %8 : vector<64x512xf32>
    %10 = arith.truncf %9 : vector<64x512xf32> to vector<64x512xbf16>
    %c0_7 = arith.constant 0 : index
    %c0_8 = arith.constant 0 : index
    %11 = vector.load %arg11[%c0_7, %c0_8] : memref<64x512xbf16, #tpu.memory_space<vmem>>, vector<64x512xbf16>
    tpu.vector_store %arg11[%c0_7, %c0_8], %10 {strides = array<i32>} : memref<64x512xbf16, #tpu.memory_space<vmem>>, vector<64x512xbf16>,
    %c0_9 = arith.constant 0 : index
    %c0_10 = arith.constant 0 : index
    %12 = vector.load %arg12[%c0_9, %c0_10] : memref<8x128xf32, #tpu.memory_space<vmem>>, vector<8x128xf32>
    %c0_11 = arith.constant 0 : index
    %c0_12 = arith.constant 0 : index
    %13 = vector.load %arg13[%c0_11, %c0_12] : memref<8x128xf32, #tpu.memory_space<vmem>>, vector<8x128xf32>
    %14 = arith.truncf %12 : vector<8x128xf32> to vector<8x128xbf16>
    %c0_13 = arith.constant 0 : index
    %c0_14 = arith.constant 0 : index
    %15 = vector.load %arg11[%c0_13, %c0_14] : memref<64x512xbf16, #tpu.memory_space<vmem>>, vector<8x512xbf16>
    %16 = arith.extf %15 : vector<8x512xbf16> to vector<8x512xf32>
    %c0_15 = arith.constant 0 : index
    %c0_16 = arith.constant 0 : index
    %17 = vector.load %arg4[%c0_15, %c0_16] : memref<128x512xbf16, #tpu.memory_space<vmem>>, vector<128x512xbf16>
    %cst_17 = arith.constant dense<0.000000e+00> : vector<8x512xf32>
    %18 = tpu.matmul %14, %17, %cst_17 {dimension_numbers = #tpu.dot_dimension_numbers<[1], [0], [0], [1], [0, 0, 1, 1], [], []>} : vector<8x128xbf16>, vector<128x512xbf16>, vector<8x512xf32> -> vector<8x512xf32>
    %19 = arith.addf %16, %18 : vector<8x512xf32>
    %20 = vector.extract_strided_slice %19 {offsets = [0, 0], sizes = [8, 128], strides = [1, 1]} : vector<8x512xf32> to vector<8x128xf32>
    %21 = arith.negf %20 : vector<8x128xf32>
    %22 = math.exp %21 : vector<8x128xf32>
    %cst_18 = arith.constant 1.000000e+00 : f32
    %23 = vector.broadcast %cst_18 : f32 to vector<8x128xf32>
    %24 = arith.addf %23, %22 : vector<8x128xf32>
    %25 = arith.divf %23, %24 : vector<8x128xf32>
    %26 = vector.extract_strided_slice %19 {offsets = [0, 128], sizes = [8, 128], strides = [1, 1]} : vector<8x512xf32> to vector<8x128xf32>
    %27 = arith.negf %26 : vector<8x128xf32>
    %28 = math.exp %27 : vector<8x128xf32>
    %cst_19 = arith.constant 1.000000e+00 : f32
    %29 = vector.broadcast %cst_19 : f32 to vector<8x128xf32>
    %30 = arith.addf %29, %28 : vector<8x128xf32>
    %31 = arith.divf %29, %30 : vector<8x128xf32>
    %32 = vector.extract_strided_slice %19 {offsets = [0, 256], sizes = [8, 128], strides = [1, 1]} : vector<8x512xf32> to vector<8x128xf32>
    %33 = math.tanh %32 : vector<8x128xf32>
    %34 = vector.extract_strided_slice %19 {offsets = [0, 384], sizes = [8, 128], strides = [1, 1]} : vector<8x512xf32> to vector<8x128xf32>
    %35 = arith.negf %34 : vector<8x128xf32>
    %36 = math.exp %35 : vector<8x128xf32>
    %cst_20 = arith.constant 1.000000e+00 : f32
    %37 = vector.broadcast %cst_20 : f32 to vector<8x128xf32>
    %38 = arith.addf %37, %36 : vector<8x128xf32>
    %39 = arith.divf %37, %38 : vector<8x128xf32>
    %40 = arith.mulf %31, %13 : vector<8x128xf32>
    %41 = arith.mulf %25, %33 : vector<8x128xf32>
    %42 = arith.addf %40, %41 : vector<8x128xf32>
    %43 = math.tanh %42 : vector<8x128xf32>
    %44 = arith.mulf %39, %43 : vector<8x128xf32>
    %45 = arith.truncf %44 : vector<8x128xf32> to vector<8x128xbf16>
    %c0_21 = arith.constant 0 : index
    %c0_22 = arith.constant 0 : index
    %c0_23 = arith.constant 0 : index
    %46 = vector.load %arg8[%c0_21, %c0_22, %c0_23] : memref<1x64x128xbf16, #tpu.memory_space<vmem>>, vector<1x8x128xbf16>
    %47 = vector.shape_cast %46 : vector<1x8x128xbf16> to vector<8x128xbf16>
    %48 = vector.shape_cast %45 : vector<8x128xbf16> to vector<1x8x128xbf16>
    tpu.vector_store %arg8[%c0_21, %c0_22, %c0_23], %48 {strides = array<i32>} : memref<1x64x128xbf16, #tpu.memory_space<vmem>>, vector<1x8x128xbf16>,
    %49 = arith.truncf %44 : vector<8x128xf32> to vector<8x128xbf16>
    %c8 = arith.constant 8 : index
    %c0_24 = arith.constant 0 : index
    %50 = vector.load %arg11[%c8, %c0_24] : memref<64x512xbf16, #tpu.memory_space<vmem>>, vector<8x512xbf16>
    %51 = arith.extf %50 : vector<8x512xbf16> to vector<8x512xf32>
    %c0_25 = arith.constant 0 : index
    %c0_26 = arith.constant 0 : index
    %52 = vector.load %arg4[%c0_25, %c0_26] : memref<128x512xbf16, #tpu.memory_space<vmem>>, vector<128x512xbf16>
    %cst_27 = arith.constant dense<0.000000e+00> : vector<8x512xf32>
    %53 = tpu.matmul %49, %52, %cst_27 {dimension_numbers = #tpu.dot_dimension_numbers<[1], [0], [0], [1], [0, 0, 1, 1], [], []>} : vector<8x128xbf16>, vector<128x512xbf16>, vector<8x512xf32> -> vector<8x512xf32>
    %54 = arith.addf %51, %53 : vector<8x512xf32>
    %55 = vector.extract_strided_slice %54 {offsets = [0, 0], sizes = [8, 128], strides = [1, 1]} : vector<8x512xf32> to vector<8x128xf32>
    %56 = arith.negf %55 : vector<8x128xf32>
    %57 = math.exp %56 : vector<8x128xf32>
    %cst_28 = arith.constant 1.000000e+00 : f32
    %58 = vector.broadcast %cst_28 : f32 to vector<8x128xf32>
    %59 = arith.addf %58, %57 : vector<8x128xf32>
    %60 = arith.divf %58, %59 : vector<8x128xf32>
    %61 = vector.extract_strided_slice %54 {offsets = [0, 128], sizes = [8, 128], strides = [1, 1]} : vector<8x512xf32> to vector<8x128xf32>
    %62 = arith.negf %61 : vector<8x128xf32>
    %63 = math.exp %62 : vector<8x128xf32>
    %cst_29 = arith.constant 1.000000e+00 : f32
    %64 = vector.broadcast %cst_29 : f32 to vector<8x128xf32>
    %65 = arith.addf %64, %63 : vector<8x128xf32>
    %66 = arith.divf %64, %65 : vector<8x128xf32>
    %67 = vector.extract_strided_slice %54 {offsets = [0, 256], sizes = [8, 128], strides = [1, 1]} : vector<8x512xf32> to vector<8x128xf32>
    %68 = math.tanh %67 : vector<8x128xf32>
    %69 = vector.extract_strided_slice %54 {offsets = [0, 384], sizes = [8, 128], strides = [1, 1]} : vector<8x512xf32> to vector<8x128xf32>
    %70 = arith.negf %69 : vector<8x128xf32>
    %71 = math.exp %70 : vector<8x128xf32>
    %cst_30 = arith.constant 1.000000e+00 : f32
    %72 = vector.broadcast %cst_30 : f32 to vector<8x128xf32>
    %73 = arith.addf %72, %71 : vector<8x128xf32>
    %74 = arith.divf %72, %73 : vector<8x128xf32>
    %75 = arith.mulf %66, %42 : vector<8x128xf32>
    %76 = arith.mulf %60, %68 : vector<8x128xf32>
    %77 = arith.addf %75, %76 : vector<8x128xf32>
    %78 = math.tanh %77 : vector<8x128xf32>
    %79 = arith.mulf %74, %78 : vector<8x128xf32>
    %80 = arith.truncf %79 : vector<8x128xf32> to vector<8x128xbf16>
    %c0_31 = arith.constant 0 : index
    %c8_32 = arith.constant 8 : index
    %c0_33 = arith.constant 0 : index
    %81 = vector.load %arg8[%c0_31, %c8_32, %c0_33] : memref<1x64x128xbf16, #tpu.memory_space<vmem>>, vector<1x8x128xbf16>
    %82 = vector.shape_cast %81 : vector<1x8x128xbf16> to vector<8x128xbf16>
    %83 = vector.shape_cast %80 : vector<8x128xbf16> to vector<1x8x128xbf16>
    tpu.vector_store %arg8[%c0_31, %c8_32, %c0_33], %83 {strides = array<i32>} : memref<1x64x128xbf16, #tpu.memory_space<vmem>>, vector<1x8x128xbf16>,
    %84 = arith.truncf %79 : vector<8x128xf32> to vector<8x128xbf16>
    %c16 = arith.constant 16 : index
    %c0_34 = arith.constant 0 : index
    %85 = vector.load %arg11[%c16, %c0_34] : memref<64x512xbf16, #tpu.memory_space<vmem>>, vector<8x512xbf16>
    %86 = arith.extf %85 : vector<8x512xbf16> to vector<8x512xf32>
    %c0_35 = arith.constant 0 : index
    %c0_36 = arith.constant 0 : index
    %87 = vector.load %arg4[%c0_35, %c0_36] : memref<128x512xbf16, #tpu.memory_space<vmem>>, vector<128x512xbf16>
    %cst_37 = arith.constant dense<0.000000e+00> : vector<8x512xf32>
    %88 = tpu.matmul %84, %87, %cst_37 {dimension_numbers = #tpu.dot_dimension_numbers<[1], [0], [0], [1], [0, 0, 1, 1], [], []>} : vector<8x128xbf16>, vector<128x512xbf16>, vector<8x512xf32> -> vector<8x512xf32>
    %89 = arith.addf %86, %88 : vector<8x512xf32>
    %90 = vector.extract_strided_slice %89 {offsets = [0, 0], sizes = [8, 128], strides = [1, 1]} : vector<8x512xf32> to vector<8x128xf32>
    %91 = arith.negf %90 : vector<8x128xf32>
    %92 = math.exp %91 : vector<8x128xf32>
    %cst_38 = arith.constant 1.000000e+00 : f32
    %93 = vector.broadcast %cst_38 : f32 to vector<8x128xf32>
    %94 = arith.addf %93, %92 : vector<8x128xf32>
    %95 = arith.divf %93, %94 : vector<8x128xf32>
    %96 = vector.extract_strided_slice %89 {offsets = [0, 128], sizes = [8, 128], strides = [1, 1]} : vector<8x512xf32> to vector<8x128xf32>
    %97 = arith.negf %96 : vector<8x128xf32>
    %98 = math.exp %97 : vector<8x128xf32>
    %cst_39 = arith.constant 1.000000e+00 : f32
    %99 = vector.broadcast %cst_39 : f32 to vector<8x128xf32>
    %100 = arith.addf %99, %98 : vector<8x128xf32>
    %101 = arith.divf %99, %100 : vector<8x128xf32>
    %102 = vector.extract_strided_slice %89 {offsets = [0, 256], sizes = [8, 128], strides = [1, 1]} : vector<8x512xf32> to vector<8x128xf32>
    %103 = math.tanh %102 : vector<8x128xf32>
    %104 = vector.extract_strided_slice %89 {offsets = [0, 384], sizes = [8, 128], strides = [1, 1]} : vector<8x512xf32> to vector<8x128xf32>
    %105 = arith.negf %104 : vector<8x128xf32>
    %106 = math.exp %105 : vector<8x128xf32>
    %cst_40 = arith.constant 1.000000e+00 : f32
    %107 = vector.broadcast %cst_40 : f32 to vector<8x128xf32>
    %108 = arith.addf %107, %106 : vector<8x128xf32>
    %109 = arith.divf %107, %108 : vector<8x128xf32>
    %110 = arith.mulf %101, %77 : vector<8x128xf32>
    %111 = arith.mulf %95, %103 : vector<8x128xf32>
    %112 = arith.addf %110, %111 : vector<8x128xf32>
    %113 = math.tanh %112 : vector<8x128xf32>
    %114 = arith.mulf %109, %113 : vector<8x128xf32>
    %115 = arith.truncf %114 : vector<8x128xf32> to vector<8x128xbf16>
    %c0_41 = arith.constant 0 : index
    %c16_42 = arith.constant 16 : index
    %c0_43 = arith.constant 0 : index
    %116 = vector.load %arg8[%c0_41, %c16_42, %c0_43] : memref<1x64x128xbf16, #tpu.memory_space<vmem>>, vector<1x8x128xbf16>
    %117 = vector.shape_cast %116 : vector<1x8x128xbf16> to vector<8x128xbf16>
    %118 = vector.shape_cast %115 : vector<8x128xbf16> to vector<1x8x128xbf16>
    tpu.vector_store %arg8[%c0_41, %c16_42, %c0_43], %118 {strides = array<i32>} : memref<1x64x128xbf16, #tpu.memory_space<vmem>>, vector<1x8x128xbf16>,
    %119 = arith.truncf %114 : vector<8x128xf32> to vector<8x128xbf16>
    %c24 = arith.constant 24 : index
    %c0_44 = arith.constant 0 : index
    %120 = vector.load %arg11[%c24, %c0_44] : memref<64x512xbf16, #tpu.memory_space<vmem>>, vector<8x512xbf16>
    %121 = arith.extf %120 : vector<8x512xbf16> to vector<8x512xf32>
    %c0_45 = arith.constant 0 : index
    %c0_46 = arith.constant 0 : index
    %122 = vector.load %arg4[%c0_45, %c0_46] : memref<128x512xbf16, #tpu.memory_space<vmem>>, vector<128x512xbf16>
    %cst_47 = arith.constant dense<0.000000e+00> : vector<8x512xf32>
    %123 = tpu.matmul %119, %122, %cst_47 {dimension_numbers = #tpu.dot_dimension_numbers<[1], [0], [0], [1], [0, 0, 1, 1], [], []>} : vector<8x128xbf16>, vector<128x512xbf16>, vector<8x512xf32> -> vector<8x512xf32>
    %124 = arith.addf %121, %123 : vector<8x512xf32>
    %125 = vector.extract_strided_slice %124 {offsets = [0, 0], sizes = [8, 128], strides = [1, 1]} : vector<8x512xf32> to vector<8x128xf32>
    %126 = arith.negf %125 : vector<8x128xf32>
    %127 = math.exp %126 : vector<8x128xf32>
    %cst_48 = arith.constant 1.000000e+00 : f32
    %128 = vector.broadcast %cst_48 : f32 to vector<8x128xf32>
    %129 = arith.addf %128, %127 : vector<8x128xf32>
    %130 = arith.divf %128, %129 : vector<8x128xf32>
    %131 = vector.extract_strided_slice %124 {offsets = [0, 128], sizes = [8, 128], strides = [1, 1]} : vector<8x512xf32> to vector<8x128xf32>
    %132 = arith.negf %131 : vector<8x128xf32>
    %133 = math.exp %132 : vector<8x128xf32>
    %cst_49 = arith.constant 1.000000e+00 : f32
    %134 = vector.broadcast %cst_49 : f32 to vector<8x128xf32>
    %135 = arith.addf %134, %133 : vector<8x128xf32>
    %136 = arith.divf %134, %135 : vector<8x128xf32>
    %137 = vector.extract_strided_slice %124 {offsets = [0, 256], sizes = [8, 128], strides = [1, 1]} : vector<8x512xf32> to vector<8x128xf32>
    %138 = math.tanh %137 : vector<8x128xf32>
    %139 = vector.extract_strided_slice %124 {offsets = [0, 384], sizes = [8, 128], strides = [1, 1]} : vector<8x512xf32> to vector<8x128xf32>
    %140 = arith.negf %139 : vector<8x128xf32>
    %141 = math.exp %140 : vector<8x128xf32>
    %cst_50 = arith.constant 1.000000e+00 : f32
    %142 = vector.broadcast %cst_50 : f32 to vector<8x128xf32>
    %143 = arith.addf %142, %141 : vector<8x128xf32>
    %144 = arith.divf %142, %143 : vector<8x128xf32>
    %145 = arith.mulf %136, %112 : vector<8x128xf32>
    %146 = arith.mulf %130, %138 : vector<8x128xf32>
    %147 = arith.addf %145, %146 : vector<8x128xf32>
    %148 = math.tanh %147 : vector<8x128xf32>
    %149 = arith.mulf %144, %148 : vector<8x128xf32>
    %150 = arith.truncf %149 : vector<8x128xf32> to vector<8x128xbf16>
    %c0_51 = arith.constant 0 : index
    %c24_52 = arith.constant 24 : index
    %c0_53 = arith.constant 0 : index
    %151 = vector.load %arg8[%c0_51, %c24_52, %c0_53] : memref<1x64x128xbf16, #tpu.memory_space<vmem>>, vector<1x8x128xbf16>
    %152 = vector.shape_cast %151 : vector<1x8x128xbf16> to vector<8x128xbf16>
    %153 = vector.shape_cast %150 : vector<8x128xbf16> to vector<1x8x128xbf16>
    tpu.vector_store %arg8[%c0_51, %c24_52, %c0_53], %153 {strides = array<i32>} : memref<1x64x128xbf16, #tpu.memory_space<vmem>>, vector<1x8x128xbf16>,
    %154 = arith.truncf %149 : vector<8x128xf32> to vector<8x128xbf16>
    %c32 = arith.constant 32 : index
    %c0_54 = arith.constant 0 : index
    %155 = vector.load %arg11[%c32, %c0_54] : memref<64x512xbf16, #tpu.memory_space<vmem>>, vector<8x512xbf16>
    %156 = arith.extf %155 : vector<8x512xbf16> to vector<8x512xf32>
    %c0_55 = arith.constant 0 : index
    %c0_56 = arith.constant 0 : index
    %157 = vector.load %arg4[%c0_55, %c0_56] : memref<128x512xbf16, #tpu.memory_space<vmem>>, vector<128x512xbf16>
    %cst_57 = arith.constant dense<0.000000e+00> : vector<8x512xf32>
    %158 = tpu.matmul %154, %157, %cst_57 {dimension_numbers = #tpu.dot_dimension_numbers<[1], [0], [0], [1], [0, 0, 1, 1], [], []>} : vector<8x128xbf16>, vector<128x512xbf16>, vector<8x512xf32> -> vector<8x512xf32>
    %159 = arith.addf %156, %158 : vector<8x512xf32>
    %160 = vector.extract_strided_slice %159 {offsets = [0, 0], sizes = [8, 128], strides = [1, 1]} : vector<8x512xf32> to vector<8x128xf32>
    %161 = arith.negf %160 : vector<8x128xf32>
    %162 = math.exp %161 : vector<8x128xf32>
    %cst_58 = arith.constant 1.000000e+00 : f32
    %163 = vector.broadcast %cst_58 : f32 to vector<8x128xf32>
    %164 = arith.addf %163, %162 : vector<8x128xf32>
    %165 = arith.divf %163, %164 : vector<8x128xf32>
    %166 = vector.extract_strided_slice %159 {offsets = [0, 128], sizes = [8, 128], strides = [1, 1]} : vector<8x512xf32> to vector<8x128xf32>
    %167 = arith.negf %166 : vector<8x128xf32>
    %168 = math.exp %167 : vector<8x128xf32>
    %cst_59 = arith.constant 1.000000e+00 : f32
    %169 = vector.broadcast %cst_59 : f32 to vector<8x128xf32>
    %170 = arith.addf %169, %168 : vector<8x128xf32>
    %171 = arith.divf %169, %170 : vector<8x128xf32>
    %172 = vector.extract_strided_slice %159 {offsets = [0, 256], sizes = [8, 128], strides = [1, 1]} : vector<8x512xf32> to vector<8x128xf32>
    %173 = math.tanh %172 : vector<8x128xf32>
    %174 = vector.extract_strided_slice %159 {offsets = [0, 384], sizes = [8, 128], strides = [1, 1]} : vector<8x512xf32> to vector<8x128xf32>
    %175 = arith.negf %174 : vector<8x128xf32>
    %176 = math.exp %175 : vector<8x128xf32>
    %cst_60 = arith.constant 1.000000e+00 : f32
    %177 = vector.broadcast %cst_60 : f32 to vector<8x128xf32>
    %178 = arith.addf %177, %176 : vector<8x128xf32>
    %179 = arith.divf %177, %178 : vector<8x128xf32>
    %180 = arith.mulf %171, %147 : vector<8x128xf32>
    %181 = arith.mulf %165, %173 : vector<8x128xf32>
    %182 = arith.addf %180, %181 : vector<8x128xf32>
    %183 = math.tanh %182 : vector<8x128xf32>
    %184 = arith.mulf %179, %183 : vector<8x128xf32>
    %185 = arith.truncf %184 : vector<8x128xf32> to vector<8x128xbf16>
    %c0_61 = arith.constant 0 : index
    %c32_62 = arith.constant 32 : index
    %c0_63 = arith.constant 0 : index
    %186 = vector.load %arg8[%c0_61, %c32_62, %c0_63] : memref<1x64x128xbf16, #tpu.memory_space<vmem>>, vector<1x8x128xbf16>
    %187 = vector.shape_cast %186 : vector<1x8x128xbf16> to vector<8x128xbf16>
    %188 = vector.shape_cast %185 : vector<8x128xbf16> to vector<1x8x128xbf16>
    tpu.vector_store %arg8[%c0_61, %c32_62, %c0_63], %188 {strides = array<i32>} : memref<1x64x128xbf16, #tpu.memory_space<vmem>>, vector<1x8x128xbf16>,
    %189 = arith.truncf %184 : vector<8x128xf32> to vector<8x128xbf16>
    %c40 = arith.constant 40 : index
    %c0_64 = arith.constant 0 : index
    %190 = vector.load %arg11[%c40, %c0_64] : memref<64x512xbf16, #tpu.memory_space<vmem>>, vector<8x512xbf16>
    %191 = arith.extf %190 : vector<8x512xbf16> to vector<8x512xf32>
    %c0_65 = arith.constant 0 : index
    %c0_66 = arith.constant 0 : index
    %192 = vector.load %arg4[%c0_65, %c0_66] : memref<128x512xbf16, #tpu.memory_space<vmem>>, vector<128x512xbf16>
    %cst_67 = arith.constant dense<0.000000e+00> : vector<8x512xf32>
    %193 = tpu.matmul %189, %192, %cst_67 {dimension_numbers = #tpu.dot_dimension_numbers<[1], [0], [0], [1], [0, 0, 1, 1], [], []>} : vector<8x128xbf16>, vector<128x512xbf16>, vector<8x512xf32> -> vector<8x512xf32>
    %194 = arith.addf %191, %193 : vector<8x512xf32>
    %195 = vector.extract_strided_slice %194 {offsets = [0, 0], sizes = [8, 128], strides = [1, 1]} : vector<8x512xf32> to vector<8x128xf32>
    %196 = arith.negf %195 : vector<8x128xf32>
    %197 = math.exp %196 : vector<8x128xf32>
    %cst_68 = arith.constant 1.000000e+00 : f32
    %198 = vector.broadcast %cst_68 : f32 to vector<8x128xf32>
    %199 = arith.addf %198, %197 : vector<8x128xf32>
    %200 = arith.divf %198, %199 : vector<8x128xf32>
    %201 = vector.extract_strided_slice %194 {offsets = [0, 128], sizes = [8, 128], strides = [1, 1]} : vector<8x512xf32> to vector<8x128xf32>
    %202 = arith.negf %201 : vector<8x128xf32>
    %203 = math.exp %202 : vector<8x128xf32>
    %cst_69 = arith.constant 1.000000e+00 : f32
    %204 = vector.broadcast %cst_69 : f32 to vector<8x128xf32>
    %205 = arith.addf %204, %203 : vector<8x128xf32>
    %206 = arith.divf %204, %205 : vector<8x128xf32>
    %207 = vector.extract_strided_slice %194 {offsets = [0, 256], sizes = [8, 128], strides = [1, 1]} : vector<8x512xf32> to vector<8x128xf32>
    %208 = math.tanh %207 : vector<8x128xf32>
    %209 = vector.extract_strided_slice %194 {offsets = [0, 384], sizes = [8, 128], strides = [1, 1]} : vector<8x512xf32> to vector<8x128xf32>
    %210 = arith.negf %209 : vector<8x128xf32>
    %211 = math.exp %210 : vector<8x128xf32>
    %cst_70 = arith.constant 1.000000e+00 : f32
    %212 = vector.broadcast %cst_70 : f32 to vector<8x128xf32>
    %213 = arith.addf %212, %211 : vector<8x128xf32>
    %214 = arith.divf %212, %213 : vector<8x128xf32>
    %215 = arith.mulf %206, %182 : vector<8x128xf32>
    %216 = arith.mulf %200, %208 : vector<8x128xf32>
    %217 = arith.addf %215, %216 : vector<8x128xf32>
    %218 = math.tanh %217 : vector<8x128xf32>
    %219 = arith.mulf %214, %218 : vector<8x128xf32>
    %220 = arith.truncf %219 : vector<8x128xf32> to vector<8x128xbf16>
    %c0_71 = arith.constant 0 : index
    %c40_72 = arith.constant 40 : index
    %c0_73 = arith.constant 0 : index
    %221 = vector.load %arg8[%c0_71, %c40_72, %c0_73] : memref<1x64x128xbf16, #tpu.memory_space<vmem>>, vector<1x8x128xbf16>
    %222 = vector.shape_cast %221 : vector<1x8x128xbf16> to vector<8x128xbf16>
    %223 = vector.shape_cast %220 : vector<8x128xbf16> to vector<1x8x128xbf16>
    tpu.vector_store %arg8[%c0_71, %c40_72, %c0_73], %223 {strides = array<i32>} : memref<1x64x128xbf16, #tpu.memory_space<vmem>>, vector<1x8x128xbf16>,
    %224 = arith.truncf %219 : vector<8x128xf32> to vector<8x128xbf16>
    %c48 = arith.constant 48 : index
    %c0_74 = arith.constant 0 : index
    %225 = vector.load %arg11[%c48, %c0_74] : memref<64x512xbf16, #tpu.memory_space<vmem>>, vector<8x512xbf16>
    %226 = arith.extf %225 : vector<8x512xbf16> to vector<8x512xf32>
    %c0_75 = arith.constant 0 : index
    %c0_76 = arith.constant 0 : index
    %227 = vector.load %arg4[%c0_75, %c0_76] : memref<128x512xbf16, #tpu.memory_space<vmem>>, vector<128x512xbf16>
    %cst_77 = arith.constant dense<0.000000e+00> : vector<8x512xf32>
    %228 = tpu.matmul %224, %227, %cst_77 {dimension_numbers = #tpu.dot_dimension_numbers<[1], [0], [0], [1], [0, 0, 1, 1], [], []>} : vector<8x128xbf16>, vector<128x512xbf16>, vector<8x512xf32> -> vector<8x512xf32>
    %229 = arith.addf %226, %228 : vector<8x512xf32>
    %230 = vector.extract_strided_slice %229 {offsets = [0, 0], sizes = [8, 128], strides = [1, 1]} : vector<8x512xf32> to vector<8x128xf32>
    %231 = arith.negf %230 : vector<8x128xf32>
    %232 = math.exp %231 : vector<8x128xf32>
    %cst_78 = arith.constant 1.000000e+00 : f32
    %233 = vector.broadcast %cst_78 : f32 to vector<8x128xf32>
    %234 = arith.addf %233, %232 : vector<8x128xf32>
    %235 = arith.divf %233, %234 : vector<8x128xf32>
    %236 = vector.extract_strided_slice %229 {offsets = [0, 128], sizes = [8, 128], strides = [1, 1]} : vector<8x512xf32> to vector<8x128xf32>
    %237 = arith.negf %236 : vector<8x128xf32>
    %238 = math.exp %237 : vector<8x128xf32>
    %cst_79 = arith.constant 1.000000e+00 : f32
    %239 = vector.broadcast %cst_79 : f32 to vector<8x128xf32>
    %240 = arith.addf %239, %238 : vector<8x128xf32>
    %241 = arith.divf %239, %240 : vector<8x128xf32>
    %242 = vector.extract_strided_slice %229 {offsets = [0, 256], sizes = [8, 128], strides = [1, 1]} : vector<8x512xf32> to vector<8x128xf32>
    %243 = math.tanh %242 : vector<8x128xf32>
    %244 = vector.extract_strided_slice %229 {offsets = [0, 384], sizes = [8, 128], strides = [1, 1]} : vector<8x512xf32> to vector<8x128xf32>
    %245 = arith.negf %244 : vector<8x128xf32>
    %246 = math.exp %245 : vector<8x128xf32>
    %cst_80 = arith.constant 1.000000e+00 : f32
    %247 = vector.broadcast %cst_80 : f32 to vector<8x128xf32>
    %248 = arith.addf %247, %246 : vector<8x128xf32>
    %249 = arith.divf %247, %248 : vector<8x128xf32>
    %250 = arith.mulf %241, %217 : vector<8x128xf32>
    %251 = arith.mulf %235, %243 : vector<8x128xf32>
    %252 = arith.addf %250, %251 : vector<8x128xf32>
    %253 = math.tanh %252 : vector<8x128xf32>
    %254 = arith.mulf %249, %253 : vector<8x128xf32>
    %255 = arith.truncf %254 : vector<8x128xf32> to vector<8x128xbf16>
    %c0_81 = arith.constant 0 : index
    %c48_82 = arith.constant 48 : index
    %c0_83 = arith.constant 0 : index
    %256 = vector.load %arg8[%c0_81, %c48_82, %c0_83] : memref<1x64x128xbf16, #tpu.memory_space<vmem>>, vector<1x8x128xbf16>
    %257 = vector.shape_cast %256 : vector<1x8x128xbf16> to vector<8x128xbf16>
    %258 = vector.shape_cast %255 : vector<8x128xbf16> to vector<1x8x128xbf16>
    tpu.vector_store %arg8[%c0_81, %c48_82, %c0_83], %258 {strides = array<i32>} : memref<1x64x128xbf16, #tpu.memory_space<vmem>>, vector<1x8x128xbf16>,
    %259 = arith.truncf %254 : vector<8x128xf32> to vector<8x128xbf16>
    %c56 = arith.constant 56 : index
    %c0_84 = arith.constant 0 : index
    %260 = vector.load %arg11[%c56, %c0_84] : memref<64x512xbf16, #tpu.memory_space<vmem>>, vector<8x512xbf16>
    %261 = arith.extf %260 : vector<8x512xbf16> to vector<8x512xf32>
    %c0_85 = arith.constant 0 : index
    %c0_86 = arith.constant 0 : index
    %262 = vector.load %arg4[%c0_85, %c0_86] : memref<128x512xbf16, #tpu.memory_space<vmem>>, vector<128x512xbf16>
    %cst_87 = arith.constant dense<0.000000e+00> : vector<8x512xf32>
    %263 = tpu.matmul %259, %262, %cst_87 {dimension_numbers = #tpu.dot_dimension_numbers<[1], [0], [0], [1], [0, 0, 1, 1], [], []>} : vector<8x128xbf16>, vector<128x512xbf16>, vector<8x512xf32> -> vector<8x512xf32>
    %264 = arith.addf %261, %263 : vector<8x512xf32>
    %265 = vector.extract_strided_slice %264 {offsets = [0, 0], sizes = [8, 128], strides = [1, 1]} : vector<8x512xf32> to vector<8x128xf32>
    %266 = arith.negf %265 : vector<8x128xf32>
    %267 = math.exp %266 : vector<8x128xf32>
    %cst_88 = arith.constant 1.000000e+00 : f32
    %268 = vector.broadcast %cst_88 : f32 to vector<8x128xf32>
    %269 = arith.addf %268, %267 : vector<8x128xf32>
    %270 = arith.divf %268, %269 : vector<8x128xf32>
    %271 = vector.extract_strided_slice %264 {offsets = [0, 128], sizes = [8, 128], strides = [1, 1]} : vector<8x512xf32> to vector<8x128xf32>
    %272 = arith.negf %271 : vector<8x128xf32>
    %273 = math.exp %272 : vector<8x128xf32>
    %cst_89 = arith.constant 1.000000e+00 : f32
    %274 = vector.broadcast %cst_89 : f32 to vector<8x128xf32>
    %275 = arith.addf %274, %273 : vector<8x128xf32>
    %276 = arith.divf %274, %275 : vector<8x128xf32>
    %277 = vector.extract_strided_slice %264 {offsets = [0, 256], sizes = [8, 128], strides = [1, 1]} : vector<8x512xf32> to vector<8x128xf32>
    %278 = math.tanh %277 : vector<8x128xf32>
    %279 = vector.extract_strided_slice %264 {offsets = [0, 384], sizes = [8, 128], strides = [1, 1]} : vector<8x512xf32> to vector<8x128xf32>
    %280 = arith.negf %279 : vector<8x128xf32>
    %281 = math.exp %280 : vector<8x128xf32>
    %cst_90 = arith.constant 1.000000e+00 : f32
    %282 = vector.broadcast %cst_90 : f32 to vector<8x128xf32>
    %283 = arith.addf %282, %281 : vector<8x128xf32>
    %284 = arith.divf %282, %283 : vector<8x128xf32>
    %285 = arith.mulf %276, %252 : vector<8x128xf32>
    %286 = arith.mulf %270, %278 : vector<8x128xf32>
    %287 = arith.addf %285, %286 : vector<8x128xf32>
    %288 = math.tanh %287 : vector<8x128xf32>
    %289 = arith.mulf %284, %288 : vector<8x128xf32>
    %290 = arith.truncf %289 : vector<8x128xf32> to vector<8x128xbf16>
    %c0_91 = arith.constant 0 : index
    %c56_92 = arith.constant 56 : index
    %c0_93 = arith.constant 0 : index
    %291 = vector.load %arg8[%c0_91, %c56_92, %c0_93] : memref<1x64x128xbf16, #tpu.memory_space<vmem>>, vector<1x8x128xbf16>
    %292 = vector.shape_cast %291 : vector<1x8x128xbf16> to vector<8x128xbf16>
    %293 = vector.shape_cast %290 : vector<8x128xbf16> to vector<1x8x128xbf16>
    tpu.vector_store %arg8[%c0_91, %c56_92, %c0_93], %293 {strides = array<i32>} : memref<1x64x128xbf16, #tpu.memory_space<vmem>>, vector<1x8x128xbf16>,
    %c0_94 = arith.constant 0 : index
    %c0_95 = arith.constant 0 : index
    %294 = vector.load %arg12[%c0_94, %c0_95] : memref<8x128xf32, #tpu.memory_space<vmem>>, vector<8x128xf32>
    tpu.vector_store %arg12[%c0_94, %c0_95], %289 {strides = array<i32>} : memref<8x128xf32, #tpu.memory_space<vmem>>, vector<8x128xf32>,
    %c0_96 = arith.constant 0 : index
    %c0_97 = arith.constant 0 : index
    %295 = vector.load %arg13[%c0_96, %c0_97] : memref<8x128xf32, #tpu.memory_space<vmem>>, vector<8x128xf32>
    tpu.vector_store %arg13[%c0_96, %c0_97], %287 {strides = array<i32>} : memref<8x128xf32, #tpu.memory_space<vmem>>, vector<8x128xf32>,
    %c0_i32_98 = arith.constant 0 : i32
    %296 = arith.cmpi eq, %arg1, %c0_i32_98 : i32
    %297 = arith.extui %296 : i1 to i32
    %c0_i32_99 = arith.constant 0 : i32
    %298 = arith.cmpi ne, %297, %c0_i32_99 : i32
    scf.if %298 {
      %c0_100 = arith.constant 0 : index
      %c0_101 = arith.constant 0 : index
      %c0_102 = arith.constant 0 : index
      %299 = vector.load %arg9[%c0_100, %c0_101, %c0_102] : memref<1x8x128xf32, #tpu.memory_space<vmem>>, vector<1x8x128xf32>
      %300 = vector.shape_cast %299 : vector<1x8x128xf32> to vector<8x128xf32>
      %301 = vector.shape_cast %289 : vector<8x128xf32> to vector<1x8x128xf32>
      tpu.vector_store %arg9[%c0_100, %c0_101, %c0_102], %301 {strides = array<i32>} : memref<1x8x128xf32, #tpu.memory_space<vmem>>, vector<1x8x128xf32>,
      %c0_103 = arith.constant 0 : index
      %c0_104 = arith.constant 0 : index
      %c0_105 = arith.constant 0 : index
      %302 = vector.load %arg10[%c0_103, %c0_104, %c0_105] : memref<1x8x128xf32, #tpu.memory_space<vmem>>, vector<1x8x128xf32>
      %303 = vector.shape_cast %302 : vector<1x8x128xf32> to vector<8x128xf32>
      %304 = vector.shape_cast %287 : vector<8x128xf32> to vector<1x8x128xf32>
      tpu.vector_store %arg10[%c0_103, %c0_104, %c0_105], %304 {strides = array<i32>} : memref<1x8x128xf32, #tpu.memory_space<vmem>>, vector<1x8x128xf32>,
    } else {
    }
    return
  }
  func.func @transform_0(%arg0: i32, %arg1: i32) -> (i32, i32, i32) {
    %c0_i32 = arith.constant 0 : i32
    %c0_i32_0 = arith.constant 0 : i32
    return %arg0, %arg1, %c0_i32 : i32, i32, i32
  }
  func.func @transform_1(%arg0: i32, %arg1: i32) -> (i32, i32) {
    %c0_i32 = arith.constant 0 : i32
    %c0_i32_0 = arith.constant 0 : i32
    %c0_i32_1 = arith.constant 0 : i32
    return %c0_i32, %c0_i32_0 : i32, i32
  }
  func.func @transform_2(%arg0: i32, %arg1: i32) -> (i32, i32) {
    %c0_i32 = arith.constant 0 : i32
    %c0_i32_0 = arith.constant 0 : i32
    %c0_i32_1 = arith.constant 0 : i32
    return %c0_i32, %c0_i32_0 : i32, i32
  }
  func.func @transform_3(%arg0: i32, %arg1: i32) -> (i32, i32) {
    %c0_i32 = arith.constant 0 : i32
    %c0_i32_0 = arith.constant 0 : i32
    %c0_i32_1 = arith.constant 0 : i32
    return %c0_i32, %c0_i32_0 : i32, i32
  }
  func.func @transform_4(%arg0: i32, %arg1: i32) -> (i32, i32, i32) {
    %c0_i32 = arith.constant 0 : i32
    %c0_i32_0 = arith.constant 0 : i32
    %c0_i32_1 = arith.constant 0 : i32
    return %arg0, %c0_i32, %c0_i32_0 : i32, i32, i32
  }
  func.func @transform_5(%arg0: i32, %arg1: i32) -> (i32, i32, i32) {
    %c0_i32 = arith.constant 0 : i32
    %c0_i32_0 = arith.constant 0 : i32
    %c0_i32_1 = arith.constant 0 : i32
    return %arg0, %c0_i32, %c0_i32_0 : i32, i32, i32
  }
  func.func @transform_6(%arg0: i32, %arg1: i32) -> (i32, i32, i32) {
    %c0_i32 = arith.constant 0 : i32
    %c0_i32_0 = arith.constant 0 : i32
    return %arg0, %arg1, %c0_i32 : i32, i32, i32
  }
  func.func @transform_7(%arg0: i32, %arg1: i32) -> (i32, i32, i32) {
    %c0_i32 = arith.constant 0 : i32
    %c0_i32_0 = arith.constant 0 : i32
    %c0_i32_1 = arith.constant 0 : i32
    return %arg0, %c0_i32, %c0_i32_0 : i32, i32, i32
  }
  func.func @transform_8(%arg0: i32, %arg1: i32) -> (i32, i32, i32) {
    %c0_i32 = arith.constant 0 : i32
    %c0_i32_0 = arith.constant 0 : i32
    %c0_i32_1 = arith.constant 0 : i32
    return %arg0, %c0_i32, %c0_i32_0 : i32, i32, i32
  }
}

</mosaic_0001>

<bundles_post_ra>
// kernel: speaker_decoder_forward.5
= control target key start
LH: loop header
LB: loop body
LE: loop exit
PB: predicated region body
PF: predicated region fallthrough
CT: control target
= control target key end

     0   :  { %v191_v0 = vmov 0.0   ;;  %vm192_vm0 = vmmov 0   ;;  %s249_s1 = inlined_call_operand.vmem [shape: bf16[128,128], index: 1, kind: input, shape index: {}]   ;;  %s250_s0 = inlined_call_operand.vmem [shape: bf16[16,128], index: 0, kind: input, shape index: {}]   ;;  %s251_s2 = inlined_call_operand.vmem [shape: f32[1,128], index: 2, kind: input, shape index: {}]   ;;  %s252_s3 = inlined_call_operand.vmem [shape: f32[16,128], index: 3, kind: output, shape index: {}]  }
   0x1   :  { %160 = vmatprep.subr.bf16.mxu0 %v191_v0  ;;  %v182_v1 = vld [vmem:[%s249_s1 + $0x38] sm:$0xff]   ;;  %176 = vmatprep.mubr.msk.bf16.mxu0 %vm192_vm0, %v191_v0  ;;  %v183_v2 = vld [vmem:[%s249_s1 + $0x30] sm:$0xff]   ;;  %v184_v3 = vld [vmem:[%s249_s1 + $0x28] sm:$0xff]  }
   0x2   :  { %161 = vmatpush3.bf16.msra.mxu0 %v182_v1  ;;  %v185_v4 = vld [vmem:[%s249_s1 + $0x20] sm:$0xff]   ;;  %v186_v5 = vld [vmem:[%s249_s1 + $0x18] sm:$0xff]   ;;  %v187_v6 = vld [vmem:[%s249_s1 + $0x10] sm:$0xff]  }
   0x3   :  { %162 = vmatprep.subr.bf16.mxu0 %v191_v0  ;;  %v188_v7 = vld [vmem:[%s249_s1 + $0x8] sm:$0xff]   ;;  %v189_v8 = vld [vmem:[%s249_s1] sm:$0xff]  }
   0x4   :  { %v190_v9 = vld [vmem:[%s250_s0] sm:$0xff]  }
   0x5   :  { %v141_v10 = vld [vmem:[%s251_s2] ss:$0 sm:$0xff] }
   0x6   :  { %163 = vmatpush3.bf16.msra.mxu0 %v183_v2 }
   0x7   :  { %164 = vmatprep.subr.bf16.mxu0 %v191_v0 }
   0xa   :  { %165 = vmatpush3.bf16.msra.mxu0 %v184_v3 }
   0xb   :  { %166 = vmatprep.subr.bf16.mxu0 %v191_v0 }
   0xe   :  { %167 = vmatpush3.bf16.msra.mxu0 %v185_v4 }
   0xf   :  { %168 = vmatprep.subr.bf16.mxu0 %v191_v0 }
  0x12   :  { %169 = vmatpush3.bf16.msra.mxu0 %v186_v5 }
  0x13   :  { %170 = vmatprep.subr.bf16.mxu0 %v191_v0 }
  0x16   :  { %171 = vmatpush3.bf16.msra.mxu0 %v187_v6 }
  0x17   :  { %172 = vmatprep.subr.bf16.mxu0 %v191_v0 }
  0x1a   :  { %173 = vmatpush3.bf16.msra.mxu0 %v188_v7 }
  0x1b   :  { %174 = vmatprep.subr.bf16.mxu0 %v191_v0 }
  0x1e   :  { %175 = vmatpush3.bf16.msra.mxu0 %v189_v8 }
  0x21   :  { %177 = vmatmul.mubr.bf16.vlgmr.msra.gmra.mxu0 %v190_v9 }
  0xe1   :  { %v128_v11 = vpop.f32.mrf.mxu0 }
  0xe2   :  { %v129_v12 = vadd.f32 %v141_v10, %v128_v11 }
  0xe3   :  { %v178_v13 = vpop.f32.mrf.mxu0 }
  0xe4   :  { %135 = vst [vmem:[%s252_s3] sm:$0xff] %v129_v12 }
  0xe5   :  { %v131_v14 = vpop.f32.mrf.mxu0 }
  0xe6   :  { %v132_v15 = vadd.f32 %v141_v10, %v131_v14 }
  0xe7   :  { %v179_v16 = vpop.f32.mrf.mxu0 }
  0xe8   :  { %136 = vst [vmem:[%s252_s3 + $0x8] sm:$0xff] %v132_v15 }

// kernel: speaker_decoder_forward.4
= control target key start
LH: loop header
LB: loop body
LE: loop exit
PB: predicated region body
PF: predicated region fallthrough
CT: control target
= control target key end

     0   :  { %s1121_s21 = smov 0   ;;  %s1289_s0 = inlined_call_operand.vmem [shape: bf16[2,8,128], index: 0, kind: input, shape index: {}]   ;;  %s1290_s1 = inlined_call_operand.vmem [shape: bf16[2,128,128], index: 1, kind: input, shape index: {}]   ;;  %s1291_s2 = inlined_call_operand.vmem [shape: f32[2,1,128], index: 2, kind: input, shape index: {}]   ;;  %s1292_s3 = inlined_call_operand.vmem [shape: bf16[128,128], index: 3, kind: input, shape index: {}]   ;;  %s1293_s4 = inlined_call_operand.vmem [shape: bf16[128,128], index: 4, kind: input, shape index: {}]   ;;  %s1294_s5 = inlined_call_operand.vmem [shape: bf16[128,128], index: 5, kind: input, shape index: {}]   ;;  %s1295_s6 = inlined_call_operand.vmem [shape: bf16[2,8,128], index: 6, kind: output, shape index: {}]  }
   0x1 LB: > { %s837_s22 = sadd.s32 4294967295, %s1081_s21   ;;  %p841_p0 = scmp.ge.s32.totalorder %s1081_s21, 1  ;;  %s1081_s21 = sphi %s1121_s21, %s16_s21  }
   0x2   : > { %p229_p1 = scmp.lt.s32.totalorder %s1081_s21, 3 }
   0x4   : > { %p230_p2 = pnand %p841_p0, %p229_p1 }
   0x5   : > { %p265_p3 = scmp.lt.s32.totalorder (!%p230_p2), %s837_s22, 1 }
   0x6   : > { %233 = sbr.rel (%p230_p2) target bundleno = 1152 (0x480), region = 44 }
   0xb   : > { %v1037_v0 = vld [vmem:[%s1292_s3 + $0x38] sm:$0xff]   ;;  %v1083_v1 = vmov 0.0   ;;  %v1038_v2 = vld [vmem:[%s1292_s3 + $0x30] sm:$0xff]   ;;  %vm1084_vm0 = vmmov 0   ;;  %s1297_s22 = smov (!%p265_p3, %s837_s22), 1  ;;  %v1039_v3 = vld [vmem:[%s1292_s3 + $0x28] sm:$0xff]   ;;  %v495_v23 = vlaneseq }
   0xc   : > { %926 = vmatprep.subr.bf16.mxu0 %v1083_v1  ;;  %946 = vmatprep.subr.bf16.mxu1 %v1083_v1  ;;  %s880_s29 = sshll.u32 %s1297_s22, 6  ;;  %v1040_v5 = vld [vmem:[%s1292_s3 + $0x20] sm:$0xff]   ;;  %v1041_v6 = vld [vmem:[%s1292_s3 + $0x18] sm:$0xff]   ;;  %v1042_v8 = vld [vmem:[%s1292_s3 + $0x10] sm:$0xff]   ;;  %s842_s15 = sshll.u32 %s1297_s22, 2  ;;  %v1085_v27 = vmov 0  }
   0xd   : > { %927 = vmatpush3.bf16.msra.mxu0 %v1037_v0  ;;  %942 = vmatprep.mubr.msk.bf16.mxu0 %vm1084_vm0, %v1083_v1  ;;  %s1152_s8 = scalar_lea.vmem %s1290_s1, %s880_s29  ;;  %v1043_v9 = vld [vmem:[%s1292_s3 + $0x8] sm:$0xff]   ;;  %v1044_v11 = vld [vmem:[%s1292_s3] sm:$0xff]   ;;  %s268_s24 = scalar_lea.vmem %s1289_s0, %s842_s15  ;;  %v496_v25 = vshrl.u32 %v495_v23, 7  ;;  %v1055_v39 = vld [vmem:[%s1293_s4 + $0x38] sm:$0xff]  }
   0xe   : > { %928 = vmatprep.subr.bf16.mxu0 %v1083_v1  ;;  %962 = vmatprep.mubr.msk.bf16.mxu1 %vm1084_vm0, %v1083_v1  ;;  %v1045_v4 = vld [vmem:[%s1152_s8 + $0x38] sm:$0xff]   ;;  %v1046_v7 = vld [vmem:[%s1152_s8 + $0x30] sm:$0xff]   ;;  %v1047_v10 = vld [vmem:[%s1152_s8 + $0x28] sm:$0xff]   ;;  %s276_s27 = scalar_lea.vmem %s1291_s2, %s1297_s22  ;;  %s280_s18 = scalar_lea.vmem %s1295_s6, %s842_s15 }
   0xf   : > { %947 = vmatpush3.bf16.xpose.msra.mxu1 %v1045_v4  ;;  %v1186_v12 = vld [vmem:[%s268_s24] sm:$0xf]  ;;  %v1049_v14 = vld [vmem:[%s1152_s8 + $0x18] sm:$0xff]   ;;  %v1050_v15 = vld [vmem:[%s1152_s8 + $0x10] sm:$0xff]   ;;  %v497_v26 = vsub.s32 0, %v496_v25 }
  0x10   : > { %948 = vmatprep.subr.bf16.mxu1 %v1083_v1  ;;  %v1048_v13 = vld [vmem:[%s1152_s8 + $0x20] sm:$0xff]   ;;  %v1051_v16 = vld [vmem:[%s1152_s8 + $0x8] sm:$0xff]   ;;  %v1057_v40 = vld [vmem:[%s1293_s4 + $0x30] sm:$0xff]  }
  0x11   : > { %929 = vmatpush3.bf16.msra.mxu0 %v1038_v2  ;;  %v1052_v17 = vld [vmem:[%s1152_s8] sm:$0xff]   ;;  %v1059_v41 = vld [vmem:[%s1293_s4 + $0x28] sm:$0xff]   ;;  %v1063_v43 = vld [vmem:[%s1293_s4 + $0x18] sm:$0xff]  }
  0x12   : > { %930 = vmatprep.subr.bf16.mxu0 %v1083_v1  ;;  %v299_v24 = vld [vmem:[%s276_s27] sm:$0x1]  ;;  %v1065_v44 = vld [vmem:[%s1293_s4 + $0x10] sm:$0xff]   ;;  %v1067_v45 = vld [vmem:[%s1293_s4 + $0x8] sm:$0xff]  }
  0x13   : > { %vm493_vm1 = vcmp.gt.f32.partialorder %v299_v24, 0.0  ;;  %v1061_v42 = vld [vmem:[%s1293_s4 + $0x20] sm:$0xff]   ;;  %v1053_v49 = vld [vmem:[%s1294_s5 + $0x38] sm:$0xff]   ;;  %v1054_v51 = vld [vmem:[%s1294_s5 + $0x30] sm:$0xff]  }
  0x14   : > { %v494_v28 = vsel %vm493_vm1, 1, %v1085_v27  ;;  %v1056_v52 = vld [vmem:[%s1294_s5 + $0x28] sm:$0xff]   ;;  %v1058_v53 = vld [vmem:[%s1294_s5 + $0x20] sm:$0xff]   ;;  %v1060_v54 = vld [vmem:[%s1294_s5 + $0x18] sm:$0xff]  }
  0x15   : > { %931 = vmatpush3.bf16.msra.mxu0 %v1039_v3  ;;  %v498_v29 = vrot.slane %v494_v28, %v497_v26  ;;  %v1062_v55 = vld [vmem:[%s1294_s5 + $0x10] sm:$0xff]   ;;  %v1064_v56 = vld [vmem:[%s1294_s5 + $0x8] sm:$0xff]   ;;  %v1066_v57 = vld [vmem:[%s1294_s5] sm:$0xff]  }
  0x16   : > { %932 = vmatprep.subr.bf16.mxu0 %v1083_v1  ;;  %v1068_v58 = vld [vmem:[%s1293_s4] sm:$0xff]  }
  0x17   : > { %949 = vmatpush3.bf16.xpose.msra.mxu1 %v1046_v7  ;;  %vm499_vm2 = vcmp.eq.s32.totalorder %v498_v29, 1 }
  0x18   : > { %950 = vmatprep.subr.bf16.mxu1 %v1083_v1 }
  0x19   : > { %933 = vmatpush3.bf16.msra.mxu0 %v1040_v5 }
  0x1a   : > { %934 = vmatprep.subr.bf16.mxu0 %v1083_v1 }
  0x1d   : > { %935 = vmatpush3.bf16.msra.mxu0 %v1041_v6 }
  0x1e   : > { %936 = vmatprep.subr.bf16.mxu0 %v1083_v1 }
  0x1f   : > { %951 = vmatpush3.bf16.xpose.msra.mxu1 %v1047_v10 }
  0x20   : > { %952 = vmatprep.subr.bf16.mxu1 %v1083_v1 }
  0x21   : > { %937 = vmatpush3.bf16.msra.mxu0 %v1042_v8 }
  0x22   : > { %938 = vmatprep.subr.bf16.mxu0 %v1083_v1 }
  0x25   : > { %939 = vmatpush3.bf16.msra.mxu0 %v1043_v9 }
  0x26   : > { %940 = vmatprep.subr.bf16.mxu0 %v1083_v1 }
  0x27   : > { %953 = vmatpush3.bf16.xpose.msra.mxu1 %v1048_v13 }
  0x28   : > { %954 = vmatprep.subr.bf16.mxu1 %v1083_v1 }
  0x29   : > { %941 = vmatpush3.bf16.msra.mxu0 %v1044_v11 }
  0x2a   : > { %966 = vmatprep.subr.bf16.mxu0 %v1083_v1 }
  0x2c   : > { %943 = vmatmul.mubr.bf16.vlgmr.msra.gmra.mxu0 %v1186_v12 }
  0x2d   : > { %967 = vmatpush3.bf16.msra.mxu0 %v1045_v4  ;;  %982 = vmatprep.mubr.msk.bf16.mxu0 %vm1084_vm0, %v1083_v1 }
  0x2e   : > { %968 = vmatprep.subr.bf16.mxu0 %v1083_v1 }
  0x2f   : > { %955 = vmatpush3.bf16.xpose.msra.mxu1 %v1049_v14 }
  0x30   : > { %956 = vmatprep.subr.bf16.mxu1 %v1083_v1 }
  0x31   : > { %969 = vmatpush3.bf16.msra.mxu0 %v1046_v7 }
  0x32   : > { %970 = vmatprep.subr.bf16.mxu0 %v1083_v1 }
  0x35   : > { %971 = vmatpush3.bf16.msra.mxu0 %v1047_v10 }
  0x36   : > { %972 = vmatprep.subr.bf16.mxu0 %v1083_v1 }
  0x37   : > { %957 = vmatpush3.bf16.xpose.msra.mxu1 %v1050_v15 }
  0x38   : > { %958 = vmatprep.subr.bf16.mxu1 %v1083_v1 }
  0x39   : > { %973 = vmatpush3.bf16.msra.mxu0 %v1048_v13 }
  0x3a   : > { %974 = vmatprep.subr.bf16.mxu0 %v1083_v1 }
  0x3d   : > { %975 = vmatpush3.bf16.msra.mxu0 %v1049_v14 }
  0x3e   : > { %976 = vmatprep.subr.bf16.mxu0 %v1083_v1 }
  0x3f   : > { %959 = vmatpush3.bf16.xpose.msra.mxu1 %v1051_v16 }
  0x40   : > { %960 = vmatprep.subr.bf16.mxu1 %v1083_v1 }
  0x41   : > { %977 = vmatpush3.bf16.msra.mxu0 %v1050_v15 }
  0x42   : > { %978 = vmatprep.subr.bf16.mxu0 %v1083_v1 }
  0x45   : > { %979 = vmatpush3.bf16.msra.mxu0 %v1051_v16 }
  0x46   : > { %980 = vmatprep.subr.bf16.mxu0 %v1083_v1 }
  0x47   : > { %961 = vmatpush3.bf16.xpose.msra.mxu1 %v1052_v17 }
  0x48   : > { %1006 = vmatprep.subr.bf16.mxu1 %v1083_v1 }
  0x49   : > { %981 = vmatpush3.bf16.msra.mxu0 %v1052_v17 }
  0x4a   : > { %986 = vmatprep.subr.bf16.mxu0 %v1083_v1 }
  0xec   : > { %v398_v18 = vpop.f32.mrf.mxu0 }
  0xed   : > { %v404_v19 = vpack.c.bf16 %v398_v18, %v398_v18 }
  0xee   : > { %v944_v20 = vpop.f32.mrf.mxu0 }
  0xef   : > { %963 = vmatmul.mubr.bf16.vlgmr.msra.gmra.mxu1 %v404_v19 }
  0xf0   : > { %v401_v21 = vpop.f32.mrf.mxu0  ;;  %1022 = vmatprep.mubr.msk.bf16.mxu1 %vm1084_vm0, %v1083_v1  ;;  %1007 = vmatpush3.bf16.msra.mxu1 %v1055_v39 }
  0xf1   : > { %1008 = vmatprep.subr.bf16.mxu1 %v1083_v1 }
  0xf2   : > { %v945_v22 = vpop.f32.mrf.mxu0 }
  0xf4   : > { %1009 = vmatpush3.bf16.msra.mxu1 %v1057_v40 }
  0xf5   : > { %1010 = vmatprep.subr.bf16.mxu1 %v1083_v1 }
  0xf8   : > { %1011 = vmatpush3.bf16.msra.mxu1 %v1059_v41 }
  0xf9   : > { %1012 = vmatprep.subr.bf16.mxu1 %v1083_v1 }
  0xfc   : > { %1013 = vmatpush3.bf16.msra.mxu1 %v1061_v42 }
  0xfd   : > { %1014 = vmatprep.subr.bf16.mxu1 %v1083_v1 }
 0x100   : > { %1015 = vmatpush3.bf16.msra.mxu1 %v1063_v43 }
 0x101   : > { %1016 = vmatprep.subr.bf16.mxu1 %v1083_v1 }
 0x104   : > { %1017 = vmatpush3.bf16.msra.mxu1 %v1065_v44 }
 0x105   : > { %1018 = vmatprep.subr.bf16.mxu1 %v1083_v1 }
 0x108   : > { %1019 = vmatpush3.bf16.msra.mxu1 %v1067_v45 }
 0x109   : > { %1020 = vmatprep.subr.bf16.mxu1 %v1083_v1 }
 0x10c   : > { %1021 = vmatpush3.bf16.msra.mxu1 %v1068_v58 }
 0x1af   : > { %v487_v30 = vpop.f32.mrf.mxu1 }
 0x1b0   : > { %v500_v31 = vsel %vm499_vm2, -1e+30, %v487_v30 }
 0x1b1   : > { %501 = vmax.xlane.f32.xlu0 %v500_v31  ;;  %v964_v32 = vpop.f32.mrf.mxu1 }
 0x1b3   : > { %v490_v33 = vpop.f32.mrf.mxu1 }
 0x1b5   : > { %v965_v34 = vpop.f32.mrf.mxu1 }
 0x23a   : > { %v502_v35 = vpop.xlane.xlu0 %501 }
 0x23b   : > { %v503_v36 = vsub.f32 %v500_v31, %v502_v35 }
 0x23d   : > { %v504_v37 = vmul.f32 1.442695, %v503_v36 }
 0x23f   : > { %1069 = vpow2.f32 %v504_v37 }
 0x24c   : > { %v1070_v38 = vpop.eup %1069 }
 0x24d   : > { %506 = vadd.xlane.f32.xlu0 %v1070_v38 }
 0x2d6   : > { %v507_v46 = vpop.xlane.xlu0 %506 }
 0x2d7   : > { %1071 = vrcp.f32 %v507_v46 }
 0x2e4   : > { %v1072_v47 = vpop.eup %1071 }
 0x2e5   : > { %v509_v48 = vmul.f32 %v1072_v47, %v1070_v38 }
 0x2e7   : > { %v510_v50 = vpack.c.bf16 %v509_v48, %v509_v48 }
 0x2e9   : > { %983 = vmatmul.mubr.bf16.vlgmr.msra.gmra.mxu0 %v510_v50 }
 0x2ea   : > { %987 = vmatpush3.bf16.msra.mxu0 %v1053_v49  ;;  %1002 = vmatprep.mubr.msk.bf16.mxu0 %vm1084_vm0, %v1083_v1 }
 0x2eb   : > { %988 = vmatprep.subr.bf16.mxu0 %v1083_v1 }
 0x2ee   : > { %989 = vmatpush3.bf16.msra.mxu0 %v1054_v51 }
 0x2ef   : > { %990 = vmatprep.subr.bf16.mxu0 %v1083_v1 }
 0x2f2   : > { %991 = vmatpush3.bf16.msra.mxu0 %v1056_v52 }
 0x2f3   : > { %992 = vmatprep.subr.bf16.mxu0 %v1083_v1 }
 0x2f6   : > { %993 = vmatpush3.bf16.msra.mxu0 %v1058_v53 }
 0x2f7   : > { %994 = vmatprep.subr.bf16.mxu0 %v1083_v1 }
 0x2fa   : > { %995 = vmatpush3.bf16.msra.mxu0 %v1060_v54 }
 0x2fb   : > { %996 = vmatprep.subr.bf16.mxu0 %v1083_v1 }
 0x2fe   : > { %997 = vmatpush3.bf16.msra.mxu0 %v1062_v55 }
 0x2ff   : > { %998 = vmatprep.subr.bf16.mxu0 %v1083_v1 }
 0x302   : > { %999 = vmatpush3.bf16.msra.mxu0 %v1064_v56 }
 0x303   : > { %1000 = vmatprep.subr.bf16.mxu0 %v1083_v1 }
 0x306   : > { %1001 = vmatpush3.bf16.msra.mxu0 %v1066_v57 }
 0x309   : > { %1003 = vmatmul.mubr.bf16.vlgmr.msra.gmra.mxu0 %v1186_v12 }
 0x3a9   : > { %v545_v59 = vpop.f32.mrf.mxu0 }
 0x3aa   : > { %v551_v60 = vpack.c.bf16 %v545_v59, %v545_v59 }
 0x3ab   : > { %v984_v61 = vpop.f32.mrf.mxu0 }
 0x3ac   : > { %1023 = vmatmul.mubr.bf16.vlgmr.msra.gmra.mxu1 %v551_v60 }
 0x3ad   : > { %v548_v62 = vpop.f32.mrf.mxu0 }
 0x3af   : > { %v985_v63 = vpop.f32.mrf.mxu0 }
 0x3c9   : > { %v666_v0 = vpop.f32.mrf.mxu0 }
 0x3cb   : > { %v1004_v2 = vpop.f32.mrf.mxu0 }
 0x3cd   : > { %v669_v3 = vpop.f32.mrf.mxu0 }
 0x3cf   : > { %v1005_v4 = vpop.f32.mrf.mxu0 }
 0x46c   : > { %v754_v1 = vpop.f32.mrf.mxu1 }
 0x46d   : > { %v755_v5 = vadd.f32 %v754_v1, %v666_v0 }
 0x46e   : > { %v1024_v6 = vpop.f32.mrf.mxu1 }
 0x46f   : > { %1073 = vtanh.f32 %v755_v5 }
 0x470   : > { %v757_v7 = vpop.f32.mrf.mxu1 }
 0x472   : > { %v1025_v8 = vpop.f32.mrf.mxu1 }
 0x47c   : > { %v1074_v9 = vpop.eup %1073 }
 0x47d   : > { %v761_v10 = vpack.c.bf16 %v1074_v9, %v1074_v9 }
 0x47f   : > { %762 = vst [vmem:[%s280_s18] sm:$0xf] %v761_v10 }
 0x480 PF: > { %s16_s21 = sadd.s32 1, %s1081_s21  }
 0x481   : > { %p13_p4 = scmp.ge.s32.totalorder %s16_s21, 4  }
 0x483   :  { %15 = sbr.rel (!%p13_p4) target bundleno = 1 (0x1), region = 80 }

// kernel: speaker_decoder_forward.3
= control target key start
LH: loop header
LB: loop body
LE: loop exit
PB: predicated region body
PF: predicated region fallthrough
CT: control target
= control target key end

     0   :  { %14 = vsyncpa [#allocation6], 0  ;;  %s4389_s0 = inlined_call_operand.vmem [shape: bf16[1,64,128], index: 0, kind: input, shape index: {}]   ;;  %s4390_s1 = inlined_call_operand.hbm [shape: bf16[128,512], index: 1, kind: input, shape index: {}]   ;;  %s4391_s2 = inlined_call_operand.hbm [shape: bf16[128,512], index: 2, kind: input, shape index: {}]   ;;  %s4392_s3 = inlined_call_operand.vmem [shape: f32[1,512], index: 3, kind: input, shape index: {}]   ;;  %s4393_s4 = inlined_call_operand.vmem [shape: f32[1,8,128], index: 4, kind: input, shape index: {}]   ;;  %s4394_s5 = inlined_call_operand.vmem [shape: f32[1,8,128], index: 5, kind: input, shape index: {}]   ;;  %s4395_s6 = inlined_call_operand.vmem [shape: bf16[1,64,128], index: 6, kind: output, shape index: {0}]   ;;  %s4396_s7 = inlined_call_operand.vmem [shape: f32[1,8,128], index: 7, kind: output, shape index: {1}]   ;;  %s4397_s8 = inlined_call_operand.vmem [shape: f32[1,8,128], index: 8, kind: output, shape index: {2}]  }
   0x1   :  { %15 = vsyncpa [#allocation8], 0  ;;  %s3756_s27 = smov [#allocation5]  }
   0x2   :  { %s23_s28 = sshll.u32 %s3756_s27, 4  ;;  %s24_s28 = int_to_ptr.vmem [resolvable:$true] %s23_s28 }
   0x3   :  { %s3720_s29 = scalar_lea.vmem %s24_s28, 4096  ;;  %p3725_p1 = scmp.lt.s32.totalorder %s24_s28, %s24_s28 }
   0x4   :  { %p3721_p0 = scmp.ne.s32.totalorder %s24_s28, %s3720_s29  ;;  %p3726_p2 = scmp.lt.s32.totalorder %s3720_s29, %s3720_s29 }
   0x6   :  { %p3727_p3 = por %p3726_p2, %p3725_p1 }
   0x8   :  { %p3728_p4 = pnand %p3727_p3, %p3721_p0 }
   0xa   :  { %3731 = shalt.err (!%p3728_p4)
}
   0xb   :  { %s3757_s30 = smov 256   ;;  %s3758_s9 = smov 16  }
   0xc   :  { %29 = dma.hbm_to_vmem [thread:$0]  %s4390_s1, 4096, %s24_s28, [#allocation6], %s3757_s30, %s3757_s30, %s3758_s9  }
   0xd   :  { %s3759_s12 = smov [#allocation7]  }
   0xe   :  { %s35_s13 = sshll.u32 %s3759_s12, 4  ;;  %s36_s13 = int_to_ptr.vmem [resolvable:$true] %s35_s13 }
   0xf   :  { %s3740_s14 = scalar_lea.vmem %s36_s13, 4096  ;;  %p3745_p6 = scmp.lt.s32.totalorder %s36_s13, %s36_s13 }
  0x10   :  { %p3741_p5 = scmp.ne.s32.totalorder %s36_s13, %s3740_s14  ;;  %p3746_p7 = scmp.lt.s32.totalorder %s3740_s14, %s3740_s14 }
  0x12   :  { %p3747_p8 = por %p3746_p7, %p3745_p6 }
  0x14   :  { %p3748_p9 = pnand %p3747_p8, %p3741_p5 }
  0x16   :  { %3751 = shalt.err (!%p3748_p9)
}
  0x17   :  { %41 = dma.hbm_to_vmem [thread:$0]  %s4391_s2, 4096, %s36_s13, [#allocation8], %s3757_s30, %s3757_s30, %s3758_s9  }
  0x18   :  { %3752 = dma.done.wait [#allocation6], 4096  }
  0x19   :  { %3753 = vsyncadd [#allocation6], 4294963200 }
  0x1a   :  { %3754 = dma.done.wait [#allocation8], 4096  }
  0x1b   :  { %3755 = vsyncadd [#allocation8], 4294963200  ;;  %v4398_v0 = vmov 0   ;;  %v3424_v1 = vld [vmem:[#allocation5 + $0xe4] ss:$16 sps:$4 sm:$0xff]   ;;  %v3485_v44 = vld [vmem:[%s4389_s0 + $0x8] sm:$0xff]  }
  0x1c   :  { %341 = vmatprep.mubr.bf16.mxu0 %v4398_v0  ;;  %414 = vmatprep.mubr.bf16.mxu1 %v4398_v0  ;;  %v3426_v2 = vld [vmem:[#allocation5 + $0xec] ss:$16 sps:$4 sm:$0xff]   ;;  %v3428_v3 = vld [vmem:[#allocation5 + $0xe0] ss:$16 sps:$4 sm:$0xff]   ;;  %v3429_v4 = vld [vmem:[#allocation5 + $0xe8] ss:$16 sps:$4 sm:$0xff]  }
  0x1d   :  { %309 = vmatprep.subr.bf16.mxu0 %v3424_v1  ;;  %382 = vmatprep.subr.bf16.mxu1 %v3426_v2  ;;  %v3430_v5 = vld [vmem:[#allocation5 + $0xc4] ss:$16 sps:$4 sm:$0xff]   ;;  %v3432_v6 = vld [vmem:[#allocation5 + $0xcc] ss:$16 sps:$4 sm:$0xff]   ;;  %v3434_v7 = vld [vmem:[#allocation5 + $0xc0] ss:$16 sps:$4 sm:$0xff]  }
  0x1e   :  { %310 = vmatpush1.bf16.msra.mxu0 %v3428_v3  ;;  %383 = vmatpush1.bf16.msra.mxu1 %v3429_v4  ;;  %v3435_v8 = vld [vmem:[#allocation5 + $0xc8] ss:$16 sps:$4 sm:$0xff]   ;;  %v3436_v9 = vld [vmem:[#allocation5 + $0xa4] ss:$16 sps:$4 sm:$0xff]   ;;  %v3438_v10 = vld [vmem:[#allocation5 + $0xac] ss:$16 sps:$4 sm:$0xff]  }
  0x1f   :  { %311 = vmatprep.subr.bf16.mxu0 %v3430_v5  ;;  %384 = vmatprep.subr.bf16.mxu1 %v3432_v6  ;;  %v3440_v11 = vld [vmem:[#allocation5 + $0xa0] ss:$16 sps:$4 sm:$0xff]   ;;  %v3441_v12 = vld [vmem:[#allocation5 + $0xa8] ss:$16 sps:$4 sm:$0xff]   ;;  %v3442_v13 = vld [vmem:[#allocation5 + $0x84] ss:$16 sps:$4 sm:$0xff]  }
  0x20   :  { %v3444_v14 = vld [vmem:[#allocation5 + $0x8c] ss:$16 sps:$4 sm:$0xff]   ;;  %v3446_v15 = vld [vmem:[#allocation5 + $0x80] ss:$16 sps:$4 sm:$0xff]   ;;  %v3447_v16 = vld [vmem:[#allocation5 + $0x88] ss:$16 sps:$4 sm:$0xff]  }
  0x21   :  { %v3448_v17 = vld [vmem:[#allocation5 + $0x64] ss:$16 sps:$4 sm:$0xff]   ;;  %v3450_v18 = vld [vmem:[#allocation5 + $0x6c] ss:$16 sps:$4 sm:$0xff]   ;;  %v3452_v19 = vld [vmem:[#allocation5 + $0x60] ss:$16 sps:$4 sm:$0xff]  }
  0x22   :  { %312 = vmatpush1.bf16.msra.mxu0 %v3434_v7  ;;  %385 = vmatpush1.bf16.msra.mxu1 %v3435_v8  ;;  %v3453_v20 = vld [vmem:[#allocation5 + $0x68] ss:$16 sps:$4 sm:$0xff]   ;;  %v3454_v21 = vld [vmem:[#allocation5 + $0x44] ss:$16 sps:$4 sm:$0xff]   ;;  %v3456_v22 = vld [vmem:[#allocation5 + $0x4c] ss:$16 sps:$4 sm:$0xff]   ;;  %v105_v8 = vlaneseq }
  0x23   :  { %313 = vmatprep.subr.bf16.mxu0 %v3436_v9  ;;  %386 = vmatprep.subr.bf16.mxu1 %v3438_v10  ;;  %v3458_v23 = vld [vmem:[#allocation5 + $0x40] ss:$16 sps:$4 sm:$0xff]   ;;  %v3459_v24 = vld [vmem:[#allocation5 + $0x48] ss:$16 sps:$4 sm:$0xff]   ;;  %v3460_v25 = vld [vmem:[#allocation5 + $0x24] ss:$16 sps:$4 sm:$0xff]  }
  0x24   :  { %v3462_v26 = vld [vmem:[#allocation5 + $0x2c] ss:$16 sps:$4 sm:$0xff]   ;;  %v3464_v27 = vld [vmem:[#allocation5 + $0x20] ss:$16 sps:$4 sm:$0xff]   ;;  %v3465_v28 = vld [vmem:[#allocation5 + $0x28] ss:$16 sps:$4 sm:$0xff]  }
  0x25   :  { %v3466_v29 = vld [vmem:[#allocation5 + $0x4] ss:$16 sps:$4 sm:$0xff]   ;;  %v3468_v30 = vld [vmem:[#allocation5 + $0xc] ss:$16 sps:$4 sm:$0xff]   ;;  %v3470_v31 = vld [vmem:[#allocation5] ss:$16 sps:$4 sm:$0xff]  }
  0x26   :  { %314 = vmatpush1.bf16.msra.mxu0 %v3440_v11  ;;  %387 = vmatpush1.bf16.msra.mxu1 %v3441_v12  ;;  %v3471_v32 = vld [vmem:[#allocation5 + $0x8] ss:$16 sps:$4 sm:$0xff]   ;;  %v3814_v33 = vld [vmem:[#allocation7 + $0xe4] ss:$16 sps:$4 sm:$0xff]   ;;  %v3816_v34 = vld [vmem:[#allocation7 + $0xec] ss:$16 sps:$4 sm:$0xff]  }
  0x27   :  { %315 = vmatprep.subr.bf16.mxu0 %v3442_v13  ;;  %388 = vmatprep.subr.bf16.mxu1 %v3444_v14  ;;  %v3472_v35 = vld [vmem:[%s4389_s0] sm:$0xff]   ;;  %v3823_v37 = vld [vmem:[#allocation7 + $0xe8] ss:$16 sps:$4 sm:$0xff]   ;;  %v3829_v39 = vld [vmem:[#allocation7 + $0xcc] ss:$16 sps:$4 sm:$0xff]   ;;  %v106_v9 = vshrl.u32 %v105_v8, 7 }
  0x28   :  { %v3821_v36 = vld [vmem:[#allocation7 + $0xe0] ss:$16 sps:$4 sm:$0xff]   ;;  %v3827_v38 = vld [vmem:[#allocation7 + $0xc4] ss:$16 sps:$4 sm:$0xff]   ;;  %v3835_v41 = vld [vmem:[#allocation7 + $0xc8] ss:$16 sps:$4 sm:$0xff]  }
  0x29   :  { %v3831_v40 = vld [vmem:[#allocation7 + $0xc0] ss:$16 sps:$4 sm:$0xff]   ;;  %v3839_v42 = vld [vmem:[#allocation7 + $0xa4] ss:$16 sps:$4 sm:$0xff]   ;;  %v3841_v43 = vld [vmem:[#allocation7 + $0xac] ss:$16 sps:$4 sm:$0xff]  }
  0x2a   :  { %316 = vmatpush1.bf16.msra.mxu0 %v3446_v15  ;;  %389 = vmatpush1.bf16.msra.mxu1 %v3447_v16  ;;  %v3848_v45 = vld [vmem:[#allocation7 + $0xa0] ss:$16 sps:$4 sm:$0xff]   ;;  %v3850_v46 = vld [vmem:[#allocation7 + $0xa8] ss:$16 sps:$4 sm:$0xff]   ;;  %v3854_v47 = vld [vmem:[#allocation7 + $0x84] ss:$16 sps:$4 sm:$0xff]  }
  0x2b   :  { %317 = vmatprep.subr.bf16.mxu0 %v3448_v17  ;;  %390 = vmatprep.subr.bf16.mxu1 %v3450_v18  ;;  %v3858_v48 = vld [vmem:[#allocation7 + $0x8c] ss:$16 sps:$4 sm:$0xff]   ;;  %v3860_v49 = vld [vmem:[#allocation7 + $0x80] ss:$16 sps:$4 sm:$0xff]   ;;  %v3862_v50 = vld [vmem:[#allocation7 + $0x88] ss:$16 sps:$4 sm:$0xff]  }
  0x2c   :  { %v3866_v51 = vld [vmem:[#allocation7 + $0x64] ss:$16 sps:$4 sm:$0xff]   ;;  %v3870_v52 = vld [vmem:[#allocation7 + $0x6c] ss:$16 sps:$4 sm:$0xff]   ;;  %v3877_v54 = vld [vmem:[#allocation7 + $0x60] ss:$16 sps:$4 sm:$0xff]  }
  0x2d   :  { %v3498_v53 = vld [vmem:[%s4389_s0 + $0x10] sm:$0xff]   ;;  %v3879_v55 = vld [vmem:[#allocation7 + $0x68] ss:$16 sps:$4 sm:$0xff]   ;;  %v3883_v57 = vld [vmem:[#allocation7 + $0x4c] ss:$16 sps:$4 sm:$0xff]   ;;  %v115_v10 = vsub.s32 2, %v106_v9 }
  0x2e   :  { %318 = vmatpush1.bf16.msra.mxu0 %v3452_v19  ;;  %391 = vmatpush1.bf16.msra.mxu1 %v3453_v20  ;;  %v3881_v56 = vld [vmem:[#allocation7 + $0x44] ss:$16 sps:$4 sm:$0xff]   ;;  %v3889_v58 = vld [vmem:[#allocation7 + $0x40] ss:$16 sps:$4 sm:$0xff]   ;;  %v3891_v59 = vld [vmem:[#allocation7 + $0x48] ss:$16 sps:$4 sm:$0xff]  }
  0x2f   :  { %319 = vmatprep.subr.bf16.mxu0 %v3454_v21  ;;  %392 = vmatprep.subr.bf16.mxu1 %v3456_v22  ;;  %v3893_v60 = vld [vmem:[#allocation7 + $0x24] ss:$16 sps:$4 sm:$0xff]   ;;  %v3895_v61 = vld [vmem:[#allocation7 + $0x2c] ss:$16 sps:$4 sm:$0xff]   ;;  %v3906_v63 = vld [vmem:[#allocation7 + $0x20] ss:$16 sps:$4 sm:$0xff]  }
  0x30   :  { %v3511_v62 = vld [vmem:[%s4389_s0 + $0x18] sm:$0xff]   ;;  %v3910_v2 = vld [vmem:[#allocation7 + $0x4] ss:$16 sps:$4 sm:$0xff]   ;;  %v3918_v4 = vld [vmem:[#allocation7] ss:$16 sps:$4 sm:$0xff]   ;;  %v107_v11 = vsub.s32 0, %v106_v9 }
  0x31   :  { %v3908_v1 = vld [vmem:[#allocation7 + $0x28] ss:$16 sps:$4 sm:$0xff]   ;;  %v3912_v3 = vld [vmem:[#allocation7 + $0xc] ss:$16 sps:$4 sm:$0xff]   ;;  %v59_v6 = vld [vmem:[%s4393_s4] sm:$0xff]  ;;  %v119_v12 = vsub.s32 3, %v106_v9 }
  0x32   :  { %320 = vmatpush1.bf16.msra.mxu0 %v3458_v23  ;;  %393 = vmatpush1.bf16.msra.mxu1 %v3459_v24  ;;  %v3920_v5 = vld [vmem:[#allocation7 + $0x8] ss:$16 sps:$4 sm:$0xff]   ;;  %v569_v7 = vpack.c.bf16 %v59_v6, %v59_v6  ;;  %v103_v13 = vld [vmem:[%s4392_s3] sm:$0xf]  ;;  %v111_v17 = vsub.s32 1, %v106_v9 }
  0x33   :  { %321 = vmatprep.subr.bf16.mxu0 %v3460_v25  ;;  %394 = vmatprep.subr.bf16.mxu1 %v3462_v26  ;;  %v3974_v16 = vrot.slane %v103_v13, %v115_v10  ;;  %v3978_v20 = vrot.slane %v103_v13, %v107_v11  ;;  %v3980_v21 = vrot.slane %v103_v13, %v119_v12 }
  0x34   :  { %v3982_v24 = vrot.slane %v103_v13, %v111_v17 }
  0x36   :  { %322 = vmatpush1.bf16.msra.mxu0 %v3464_v27  ;;  %395 = vmatpush1.bf16.msra.mxu1 %v3465_v28 }
  0x37   :  { %323 = vmatprep.subr.bf16.mxu0 %v3466_v29  ;;  %396 = vmatprep.subr.bf16.mxu1 %v3468_v30 }
  0x3a   :  { %324 = vmatpush1.bf16.msra.mxu0 %v3470_v31  ;;  %397 = vmatpush1.bf16.msra.mxu1 %v3471_v32 }
  0x3b   :  { %768 = vmatprep.subr.bf16.mxu0 %v3814_v33  ;;  %809 = vmatprep.subr.bf16.mxu1 %v3816_v34 }
  0x3d   :  { %342 = vmatmul.mubr.bf16.vlgmr.msra.gmra.mxu0 %v3472_v35  ;;  %415 = vmatmul.mubr.bf16.vlgmr.msra.gmra.mxu1 %v3472_v35 }
  0x3e   :  { %769 = vmatpush1.bf16.msra.mxu0 %v3821_v36  ;;  %810 = vmatpush1.bf16.msra.mxu1 %v3823_v37 }
  0x3f   :  { %770 = vmatprep.subr.bf16.mxu0 %v3827_v38  ;;  %811 = vmatprep.subr.bf16.mxu1 %v3829_v39 }
  0x40   :  { %351 = vmatprep.mubr.bf16.mxu0 %v4398_v0  ;;  %424 = vmatprep.mubr.bf16.mxu1 %v4398_v0 }
  0x42   :  { %771 = vmatpush1.bf16.msra.mxu0 %v3831_v40  ;;  %812 = vmatpush1.bf16.msra.mxu1 %v3835_v41 }
  0x43   :  { %772 = vmatprep.subr.bf16.mxu0 %v3839_v42  ;;  %813 = vmatprep.subr.bf16.mxu1 %v3841_v43 }
  0x45   :  { %352 = vmatmul.mubr.bf16.gmra.mxu0 %v3485_v44  ;;  %425 = vmatmul.mubr.bf16.gmra.mxu1 %v3485_v44 }
  0x46   :  { %773 = vmatpush1.bf16.msra.mxu0 %v3848_v45  ;;  %814 = vmatpush1.bf16.msra.mxu1 %v3850_v46 }
  0x47   :  { %774 = vmatprep.subr.bf16.mxu0 %v3854_v47  ;;  %815 = vmatprep.subr.bf16.mxu1 %v3858_v48 }
  0x48   :  { %361 = vmatprep.mubr.bf16.mxu0 %v4398_v0  ;;  %434 = vmatprep.mubr.bf16.mxu1 %v4398_v0 }
  0x4a   :  { %775 = vmatpush1.bf16.msra.mxu0 %v3860_v49  ;;  %816 = vmatpush1.bf16.msra.mxu1 %v3862_v50 }
  0x4b   :  { %776 = vmatprep.subr.bf16.mxu0 %v3866_v51  ;;  %817 = vmatprep.subr.bf16.mxu1 %v3870_v52 }
  0x4d   :  { %362 = vmatmul.mubr.bf16.gmra.mxu0 %v3498_v53  ;;  %435 = vmatmul.mubr.bf16.gmra.mxu1 %v3498_v53 }
  0x4e   :  { %777 = vmatpush1.bf16.msra.mxu0 %v3877_v54  ;;  %818 = vmatpush1.bf16.msra.mxu1 %v3879_v55 }
  0x4f   :  { %778 = vmatprep.subr.bf16.mxu0 %v3881_v56  ;;  %819 = vmatprep.subr.bf16.mxu1 %v3883_v57 }
  0x50   :  { %371 = vmatprep.mubr.bf16.mxu0 %v4398_v0  ;;  %444 = vmatprep.mubr.bf16.mxu1 %v4398_v0 }
  0x52   :  { %779 = vmatpush1.bf16.msra.mxu0 %v3889_v58  ;;  %820 = vmatpush1.bf16.msra.mxu1 %v3891_v59 }
  0x53   :  { %780 = vmatprep.subr.bf16.mxu0 %v3893_v60  ;;  %821 = vmatprep.subr.bf16.mxu1 %v3895_v61 }
  0x55   :  { %372 = vmatmul.mubr.bf16.gmra.mxu0 %v3511_v62  ;;  %445 = vmatmul.mubr.bf16.gmra.mxu1 %v3511_v62 }
  0x56   :  { %781 = vmatpush1.bf16.msra.mxu0 %v3906_v63  ;;  %822 = vmatpush1.bf16.msra.mxu1 %v3908_v1 }
  0x57   :  { %782 = vmatprep.subr.bf16.mxu0 %v3910_v2  ;;  %823 = vmatprep.subr.bf16.mxu1 %v3912_v3 }
  0x58   :  { %800 = vmatprep.mubr.bf16.mxu0 %v4398_v0  ;;  %841 = vmatprep.mubr.bf16.mxu1 %v4398_v0 }
  0x5a   :  { %783 = vmatpush1.bf16.msra.mxu0 %v3918_v4  ;;  %824 = vmatpush1.bf16.msra.mxu1 %v3920_v5 }
  0x5b   :  { %1078 = vmatprep.subr.bf16.mxu0 %v3814_v33  ;;  %1119 = vmatprep.subr.bf16.mxu1 %v3816_v34 }
  0x5d   :  { %801 = vmatmul.mubr.bf16.vlgmr.msra.gmra.mxu0 %v569_v7  ;;  %842 = vmatmul.mubr.bf16.vlgmr.msra.gmra.mxu1 %v569_v7 }
  0x5e   :  { %1079 = vmatpush1.bf16.msra.mxu0 %v3821_v36  ;;  %1120 = vmatpush1.bf16.msra.mxu1 %v3823_v37 }
  0x5f   :  { %1080 = vmatprep.subr.bf16.mxu0 %v3827_v38  ;;  %1121 = vmatprep.subr.bf16.mxu1 %v3829_v39 }
  0x60   :  { %1110 = vmatprep.mubr.bf16.mxu0 %v4398_v0  ;;  %1151 = vmatprep.mubr.bf16.mxu1 %v4398_v0 }
  0x62   :  { %1081 = vmatpush1.bf16.msra.mxu0 %v3831_v40  ;;  %1122 = vmatpush1.bf16.msra.mxu1 %v3835_v41 }
  0x63   :  { %1082 = vmatprep.subr.bf16.mxu0 %v3839_v42  ;;  %1123 = vmatprep.subr.bf16.mxu1 %v3841_v43 }
  0x66   :  { %1083 = vmatpush1.bf16.msra.mxu0 %v3848_v45  ;;  %1124 = vmatpush1.bf16.msra.mxu1 %v3850_v46 }
  0x67   :  { %1084 = vmatprep.subr.bf16.mxu0 %v3854_v47  ;;  %1125 = vmatprep.subr.bf16.mxu1 %v3858_v48 }
  0x6a   :  { %1085 = vmatpush1.bf16.msra.mxu0 %v3860_v49  ;;  %1126 = vmatpush1.bf16.msra.mxu1 %v3862_v50 }
  0x6b   :  { %1086 = vmatprep.subr.bf16.mxu0 %v3866_v51  ;;  %1127 = vmatprep.subr.bf16.mxu1 %v3870_v52 }
  0x6e   :  { %1087 = vmatpush1.bf16.msra.mxu0 %v3877_v54  ;;  %1128 = vmatpush1.bf16.msra.mxu1 %v3879_v55 }
  0x6f   :  { %1088 = vmatprep.subr.bf16.mxu0 %v3881_v56  ;;  %1129 = vmatprep.subr.bf16.mxu1 %v3883_v57 }
  0x72   :  { %1089 = vmatpush1.bf16.msra.mxu0 %v3889_v58  ;;  %1130 = vmatpush1.bf16.msra.mxu1 %v3891_v59 }
  0x73   :  { %1090 = vmatprep.subr.bf16.mxu0 %v3893_v60  ;;  %1131 = vmatprep.subr.bf16.mxu1 %v3895_v61 }
  0x76   :  { %1091 = vmatpush1.bf16.msra.mxu0 %v3906_v63  ;;  %1132 = vmatpush1.bf16.msra.mxu1 %v3908_v1 }
  0x77   :  { %1092 = vmatprep.subr.bf16.mxu0 %v3910_v2  ;;  %1133 = vmatprep.subr.bf16.mxu1 %v3912_v3 }
  0x7a   :  { %1093 = vmatpush1.bf16.msra.mxu0 %v3918_v4  ;;  %1134 = vmatpush1.bf16.msra.mxu1 %v3920_v5 }
  0x7b   :  { %1388 = vmatprep.subr.bf16.mxu0 %v3814_v33  ;;  %1429 = vmatprep.subr.bf16.mxu1 %v3816_v34 }
  0xfd   :  { %v343_v14 = vpop.f32.mrf.mxu0  ;;  %v3972_v15 = vpop.f32.mrf.mxu1 }
  0xff   :  { %v345_v18 = vpop.f32.mrf.mxu0  ;;  %v3976_v19 = vpop.f32.mrf.mxu1 }
 0x101   :  { %v347_v22 = vpop.f32.mrf.mxu0  ;;  %v420_v23 = vpop.f32.mrf.mxu1 }
 0x102   :  { %v348_v25 = vadd.f32 %v347_v22, %v3978_v20  ;;  %v421_v26 = vadd.f32 %v420_v23, %v3974_v16 }
 0x103   :  { %v349_v27 = vpop.f32.mrf.mxu0  ;;  %v422_v28 = vpop.f32.mrf.mxu1 }
 0x104   :  { %v350_v29 = vadd.f32 %v349_v27, %v3982_v24  ;;  %v423_v30 = vadd.f32 %v422_v28, %v3980_v21 }
 0x105   :  { %v353_v31 = vpop.f32.mrf.mxu0  ;;  %v426_v32 = vpop.f32.mrf.mxu1 }
 0x106   :  { %v3988_v33 = vpack.c.bf16 %v350_v29, %v348_v25  ;;  %v3990_v34 = vpack.c.bf16 %v423_v30, %v421_v26  ;;  %v354_v35 = vadd.f32 %v353_v31, %v3978_v20  ;;  %v427_v44 = vadd.f32 %v426_v32, %v3974_v16 }
 0x107   :  { %v355_v53 = vpop.f32.mrf.mxu0  ;;  %v428_v62 = vpop.f32.mrf.mxu1 }
 0x108   :  { %v356_v6 = vadd.f32 %v355_v53, %v3982_v24  ;;  %v429_v7 = vadd.f32 %v428_v62, %v3980_v21 }
 0x109   :  { %v357_v8 = vpop.f32.mrf.mxu0  ;;  %v430_v9 = vpop.f32.mrf.mxu1 }
 0x10a   :  { %v3996_v10 = vpack.c.bf16 %v356_v6, %v354_v35  ;;  %v3998_v11 = vpack.c.bf16 %v429_v7, %v427_v44  ;;  %v358_v12 = vadd.f32 %v357_v8, %v3978_v20  ;;  %v431_v13 = vadd.f32 %v430_v9, %v3974_v16 }
 0x10b   :  { %v359_v17 = vpop.f32.mrf.mxu0  ;;  %v432_v22 = vpop.f32.mrf.mxu1 }
 0x10c   :  { %v360_v23 = vadd.f32 %v359_v17, %v3982_v24  ;;  %v433_v25 = vadd.f32 %v432_v22, %v3980_v21  ;;  %v346_v22 = vadd.f32 %v345_v18, %v3982_v24 }
 0x10d   :  { %v363_v26 = vpop.f32.mrf.mxu0  ;;  %v436_v27 = vpop.f32.mrf.mxu1 }
 0x10e   :  { %v4004_v28 = vpack.c.bf16 %v360_v23, %v358_v12  ;;  %v4006_v29 = vpack.c.bf16 %v433_v25, %v431_v13  ;;  %v364_v30 = vadd.f32 %v363_v26, %v3978_v20  ;;  %v437_v31 = vadd.f32 %v436_v27, %v3974_v16 }
 0x10f   :  { %v365_v32 = vpop.f32.mrf.mxu0  ;;  %v438_v35 = vpop.f32.mrf.mxu1  ;;  %v344_v26 = vadd.f32 %v343_v14, %v3978_v20 }
 0x110   :  { %v366_v44 = vadd.f32 %v365_v32, %v3982_v24  ;;  %v439_v53 = vadd.f32 %v438_v35, %v3980_v21 }
 0x111   :  { %v367_v62 = vpop.f32.mrf.mxu0  ;;  %v440_v6 = vpop.f32.mrf.mxu1 }
 0x112   :  { %v4012_v7 = vpack.c.bf16 %v366_v44, %v364_v30  ;;  %v4014_v8 = vpack.c.bf16 %v439_v53, %v437_v31  ;;  %v368_v9 = vadd.f32 %v367_v62, %v3978_v20  ;;  %v441_v12 = vadd.f32 %v440_v6, %v3974_v16 }
 0x113   :  { %v369_v13 = vpop.f32.mrf.mxu0  ;;  %v442_v17 = vpop.f32.mrf.mxu1  ;;  %v3403_v6 = vpack.c.bf16 %v346_v22, %v344_v26 }
 0x114   :  { %4404 = vst [vmem:[#allocation11_spill] sm:$0xff] %v4014_v8  ;;  %v370_v23 = vadd.f32 %v369_v13, %v3982_v24  ;;  %v443_v25 = vadd.f32 %v442_v17, %v3980_v21 }
 0x115   :  { %v373_v27 = vpop.f32.mrf.mxu0  ;;  %v446_v32 = vpop.f32.mrf.mxu1  ;;  %v572_v26 = vunpack.c.l.bf16 %v3403_v6 }
 0x116   :  { %v4022_v30 = vpack.c.bf16 %v370_v23, %v368_v9  ;;  %v4024_v31 = vpack.c.bf16 %v443_v25, %v441_v12  ;;  %v374_v35 = vadd.f32 %v373_v27, %v3978_v20  ;;  %v447_v44 = vadd.f32 %v446_v32, %v3974_v16 }
 0x117   :  { %v375_v53 = vpop.f32.mrf.mxu0  ;;  %v448_v62 = vpop.f32.mrf.mxu1 }
 0x118   :  { %4405 = vst [vmem:[#allocation12_spill] sm:$0xff] %v4024_v31  ;;  %v376_v18 = vadd.f32 %v375_v53, %v3982_v24  ;;  %v449_v13 = vadd.f32 %v448_v62, %v3980_v21 }
 0x119   :  { %v377_v17 = vpop.f32.mrf.mxu0  ;;  %v450_v0 = vpop.f32.mrf.mxu1 }
 0x11a   :  { %v4030_v14 = vpack.c.bf16 %v376_v18, %v374_v35  ;;  %v4032_v8 = vpack.c.bf16 %v449_v13, %v447_v44  ;;  %v378_v9 = vadd.f32 %v377_v17, %v3978_v20  ;;  %v451_v12 = vadd.f32 %v450_v0, %v3974_v16 }
 0x11b   :  { %v379_v23 = vpop.f32.mrf.mxu0  ;;  %v452_v25 = vpop.f32.mrf.mxu1  ;;  %v573_v44 = vunpack.c.h.bf16 %v3403_v6  ;;  %v417_v20 = vadd.f32 %v3972_v15, %v3974_v16  ;;  %v419_v0 = vadd.f32 %v3976_v19, %v3980_v21 }
 0x11c   :  { %4406 = vst [vmem:[#allocation13_spill] sm:$0xff] %v4032_v8  ;;  %v380_v27 = vadd.f32 %v379_v23, %v3982_v24  ;;  %v453_v22 = vadd.f32 %v452_v25, %v3980_v21 }
 0x11d   :  { %v802_v32 = vpop.f32.mrf.mxu0  ;;  %v843_v53 = vpop.f32.mrf.mxu1 }
 0x11e   :  { %v4038_v62 = vpack.c.bf16 %v380_v27, %v378_v9  ;;  %v4040_v31 = vpack.c.bf16 %v453_v22, %v451_v12  ;;  %v850_v35 = vadd.f32 %v802_v32, %v572_v26  ;;  %v3404_v9 = vpack.c.bf16 %v419_v0, %v417_v20  ;;  %v61_v20 = vld [vmem:[%s4394_s5] sm:$0xff] }
 0x11f   :  { %v804_v18 = vpop.f32.mrf.mxu0  ;;  %v845_v13 = vpop.f32.mrf.mxu1 }
 0x120   :  { %4407 = vst [vmem:[#allocation14_spill] sm:$0xff] %v4040_v31  ;;  %v3155_v24 = vmul.f32 -1.442695, %v850_v35  ;;  %v851_v17 = vadd.f32 %v804_v18, %v573_v44  ;;  %v575_v22 = vunpack.c.h.bf16 %v3404_v9  ;;  %v574_v26 = vunpack.c.l.bf16 %v3404_v9 }
 0x121   :  { %v806_v23 = vpop.f32.mrf.mxu0  ;;  %v847_v25 = vpop.f32.mrf.mxu1  ;;  %v4408_v9 = vmov 0  }
 0x122   :  { %3584 = vpow2.f32 %v3155_v24  ;;  %v3156_v8 = vmul.f32 -1.442695, %v851_v17  ;;  %v853_v6 = vadd.f32 %v845_v13, %v575_v22  ;;  %v852_v16 = vadd.f32 %v843_v53, %v574_v26 }
 0x123   :  { %v807_v27 = vpop.f32.mrf.mxu0  ;;  %v848_v12 = vpop.f32.mrf.mxu1 }
 0x124   :  { %3586 = vpow2.f32 %v3156_v8  ;;  %v3157_v32 = vmul.f32 -1.442695, %v853_v6 }
 0x126   :  { %3588 = vpow2.f32 %v3157_v32 }
 0x12f   :  { %v3585_v15 = vpop.eup %3584 }
 0x130   :  { %v857_v31 = vadd.f32 1.0, %v3585_v15 }
 0x131   :  { %v3587_v19 = vpop.eup %3586 }
 0x132   :  { %3590 = vrcp.f32 %v857_v31  ;;  %v863_v21 = vadd.f32 1.0, %v3587_v19  ;;  %v885_v19 = vunpack.c.h.bf16 %v3990_v34 }
 0x133   :  { %3592 = vtanh.f32 %v852_v16  ;;  %v3589_v35 = vpop.eup %3588 }
 0x134   :  { %3594 = vrcp.f32 %v863_v21  ;;  %v870_v18 = vadd.f32 1.0, %v3589_v35  ;;  %v884_v35 = vunpack.c.l.bf16 %v3990_v34 }
 0x136   :  { %3596 = vrcp.f32 %v870_v18 }
 0x13f   :  { %v3591_v44 = vpop.eup %3590 }
 0x140   :  { %v3593_v8 = vpop.eup %3592 }
 0x141   :  { %v3595_v0 = vpop.eup %3594  ;;  %v874_v13 = vmul.f32 %v3593_v8, %v3591_v44 }
 0x142   :  { %v873_v24 = vmul.f32 %v3595_v0, %v61_v20 }
 0x143   :  { %v3597_v31 = vpop.eup %3596 }
 0x144   :  { %v4049_v17 = vadd.f32 %v874_v13, %v873_v24 }
 0x146   :  { %3598 = vtanh.f32 %v4049_v17 }
 0x153   :  { %v3599_v53 = vpop.eup %3598 }
 0x154   :  { %v877_v23 = vmul.f32 %v3599_v53, %v3597_v31 }
 0x156   :  { %v878_v25 = vpack.c.bf16 %v877_v23, %v877_v23 }
 0x158   :  { %879 = vst [vmem:[%s4395_s6] sm:$0xf] %v878_v25  ;;  %1111 = vmatmul.mubr.bf16.vlgmr.msra.gmra.mxu0 %v878_v25  ;;  %1152 = vmatmul.mubr.bf16.vlgmr.msra.gmra.mxu1 %v878_v25 }
 0x159   :  { %1389 = vmatpush1.bf16.msra.mxu0 %v3821_v36  ;;  %1430 = vmatpush1.bf16.msra.mxu1 %v3823_v37  ;;  %v882_v36 = vunpack.c.l.bf16 %v3988_v33 }
 0x15a   :  { %1390 = vmatprep.subr.bf16.mxu0 %v3827_v38  ;;  %1431 = vmatprep.subr.bf16.mxu1 %v3829_v39 }
 0x15b   :  { %1420 = vmatprep.mubr.bf16.mxu0 %v4408_v9  ;;  %1461 = vmatprep.mubr.bf16.mxu1 %v4408_v9 }
 0x15d   :  { %1391 = vmatpush1.bf16.msra.mxu0 %v3831_v40  ;;  %1432 = vmatpush1.bf16.msra.mxu1 %v3835_v41  ;;  %v883_v40 = vunpack.c.h.bf16 %v3988_v33 }
 0x15e   :  { %1392 = vmatprep.subr.bf16.mxu0 %v3839_v42  ;;  %1433 = vmatprep.subr.bf16.mxu1 %v3841_v43 }
 0x161   :  { %1393 = vmatpush1.bf16.msra.mxu0 %v3848_v45  ;;  %1434 = vmatpush1.bf16.msra.mxu1 %v3850_v46 }
 0x162   :  { %1394 = vmatprep.subr.bf16.mxu0 %v3854_v47  ;;  %1435 = vmatprep.subr.bf16.mxu1 %v3858_v48 }
 0x165   :  { %1395 = vmatpush1.bf16.msra.mxu0 %v3860_v49  ;;  %1436 = vmatpush1.bf16.msra.mxu1 %v3862_v50 }
 0x166   :  { %1396 = vmatprep.subr.bf16.mxu0 %v3866_v51  ;;  %1437 = vmatprep.subr.bf16.mxu1 %v3870_v52 }
 0x169   :  { %1397 = vmatpush1.bf16.msra.mxu0 %v3877_v54  ;;  %1438 = vmatpush1.bf16.msra.mxu1 %v3879_v55 }
 0x16a   :  { %1398 = vmatprep.subr.bf16.mxu0 %v3881_v56  ;;  %1439 = vmatprep.subr.bf16.mxu1 %v3883_v57 }
 0x16d   :  { %1399 = vmatpush1.bf16.msra.mxu0 %v3889_v58  ;;  %1440 = vmatpush1.bf16.msra.mxu1 %v3891_v59 }
 0x16e   :  { %1400 = vmatprep.subr.bf16.mxu0 %v3893_v60  ;;  %1441 = vmatprep.subr.bf16.mxu1 %v3895_v61 }
 0x171   :  { %1401 = vmatpush1.bf16.msra.mxu0 %v3906_v63  ;;  %1442 = vmatpush1.bf16.msra.mxu1 %v3908_v1 }
 0x172   :  { %1402 = vmatprep.subr.bf16.mxu0 %v3910_v2  ;;  %1443 = vmatprep.subr.bf16.mxu1 %v3912_v3 }
 0x175   :  { %1403 = vmatpush1.bf16.msra.mxu0 %v3918_v4  ;;  %1444 = vmatpush1.bf16.msra.mxu1 %v3920_v5 }
 0x218   :  { %v1112_v37 = vpop.f32.mrf.mxu0  ;;  %v1153_v38 = vpop.f32.mrf.mxu1 }
 0x219   :  { %v1160_v39 = vadd.f32 %v1112_v37, %v882_v36  ;;  %v1162_v44 = vadd.f32 %v1153_v38, %v884_v35 }
 0x21a   :  { %v1114_v41 = vpop.f32.mrf.mxu0  ;;  %v1155_v27 = vpop.f32.mrf.mxu1 }
 0x21b   :  { %v3190_v12 = vmul.f32 -1.442695, %v1160_v39  ;;  %v1161_v22 = vadd.f32 %v1114_v41, %v883_v40  ;;  %v1163_v21 = vadd.f32 %v1155_v27, %v885_v19  ;;  %v4102_v41 = vld [vmem:[#allocation7 + $0xec] ss:$16 sps:$4 sm:$0xff]   ;;  %v4104_v27 = vld [vmem:[#allocation7 + $0xe0] ss:$16 sps:$4 sm:$0xff]  }
 0x21c   :  { %v1116_v6 = vpop.f32.mrf.mxu0  ;;  %v1157_v26 = vpop.f32.mrf.mxu1  ;;  %1739 = vmatprep.subr.bf16.mxu1 %v4102_v41 }
 0x21d   :  { %3600 = vpow2.f32 %v3190_v12  ;;  %v3191_v32 = vmul.f32 -1.442695, %v1161_v22  ;;  %v3192_v20 = vmul.f32 -1.442695, %v1163_v21  ;;  %v4106_v12 = vld [vmem:[#allocation7 + $0xe8] ss:$16 sps:$4 sm:$0xff]  }
 0x21e   :  { %v1117_v15 = vpop.f32.mrf.mxu0  ;;  %v1158_v16 = vpop.f32.mrf.mxu1  ;;  %v4112_v22 = vld [vmem:[#allocation7 + $0xc4] ss:$16 sps:$4 sm:$0xff]   ;;  %v4114_v6 = vld [vmem:[#allocation7 + $0xcc] ss:$16 sps:$4 sm:$0xff]   ;;  %v4116_v26 = vld [vmem:[#allocation7 + $0xc0] ss:$16 sps:$4 sm:$0xff]  }
 0x21f   :  { %3602 = vpow2.f32 %v3191_v32  ;;  %v4118_v32 = vld [vmem:[#allocation7 + $0xc8] ss:$16 sps:$4 sm:$0xff]  }
 0x220   :  { %3604 = vtanh.f32 %v1162_v44 }
 0x221   :  { %3606 = vpow2.f32 %v3192_v20 }
 0x22a   :  { %v3601_v8 = vpop.eup %3600 }
 0x22b   :  { %v1167_v33 = vadd.f32 1.0, %v3601_v8 }
 0x22c   :  { %v3603_v0 = vpop.eup %3602 }
 0x22d   :  { %3608 = vrcp.f32 %v1167_v33  ;;  %v1173_v18 = vadd.f32 1.0, %v3603_v0  ;;  %v3605_v13 = vpop.eup %3604  ;;  %v4169_v0 = vld [vmem:[#allocation7 + $0xa4] ss:$16 sps:$4 sm:$0xff]  }
 0x22e   :  { %v3607_v24 = vpop.eup %3606 }
 0x22f   :  { %3610 = vrcp.f32 %v1173_v18  ;;  %v1180_v25 = vadd.f32 1.0, %v3607_v24  ;;  %v4171_v18 = vld [vmem:[#allocation7 + $0xac] ss:$16 sps:$4 sm:$0xff]   ;;  %v4175_v24 = vld [vmem:[#allocation7 + $0xa8] ss:$16 sps:$4 sm:$0xff]  }
 0x231   :  { %3612 = vrcp.f32 %v1180_v25  ;;  %v4187_v25 = vld [vmem:[#allocation7 + $0x88] ss:$16 sps:$4 sm:$0xff]  }
 0x23a   :  { %v3609_v31 = vpop.eup %3608 }
 0x23b   :  { %v1184_v53 = vmul.f32 %v3609_v31, %v3605_v13  ;;  %v4173_v13 = vld [vmem:[#allocation7 + $0xa0] ss:$16 sps:$4 sm:$0xff]   ;;  %v4181_v31 = vld [vmem:[#allocation7 + $0x84] ss:$16 sps:$4 sm:$0xff]  }
 0x23c   :  { %v3611_v23 = vpop.eup %3610 }
 0x23d   :  { %v1183_v36 = vmul.f32 %v3611_v23, %v4049_v17  ;;  %v4100_v17 = vld [vmem:[#allocation7 + $0xe4] ss:$16 sps:$4 sm:$0xff]   ;;  %v4185_v23 = vld [vmem:[#allocation7 + $0x80] ss:$16 sps:$4 sm:$0xff]  }
 0x23e   :  { %v3613_v34 = vpop.eup %3612  ;;  %1698 = vmatprep.subr.bf16.mxu0 %v4100_v17 }
 0x23f   :  { %v4092_v37 = vadd.f32 %v1184_v53, %v1183_v36  ;;  %v4183_v53 = vld [vmem:[#allocation7 + $0x8c] ss:$16 sps:$4 sm:$0xff]   ;;  %v4191_v36 = vld [vmem:[#allocation7 + $0x64] ss:$16 sps:$4 sm:$0xff]  }
 0x241   :  { %3614 = vtanh.f32 %v4092_v37 }
 0x24e   :  { %v3615_v38 = vpop.eup %3614 }
 0x24f   :  { %v1187_v39 = vmul.f32 %v3615_v38, %v3613_v34  ;;  %v4197_v34 = vld [vmem:[#allocation7 + $0x60] ss:$16 sps:$4 sm:$0xff]   ;;  %v4199_v38 = vld [vmem:[#allocation7 + $0x68] ss:$16 sps:$4 sm:$0xff]  }
 0x251   :  { %v1188_v40 = vpack.c.bf16 %v1187_v39, %v1187_v39  ;;  %v4203_v39 = vld [vmem:[#allocation7 + $0x44] ss:$16 sps:$4 sm:$0xff]  }
 0x253   :  { %1189 = vst [vmem:[%s4395_s6 + $0x4] sm:$0xf] %v1188_v40  ;;  %1421 = vmatmul.mubr.bf16.vlgmr.msra.gmra.mxu0 %v1188_v40  ;;  %1462 = vmatmul.mubr.bf16.vlgmr.msra.gmra.mxu1 %v1188_v40  ;;  %v4205_v40 = vld [vmem:[#allocation7 + $0x4c] ss:$16 sps:$4 sm:$0xff]  }
 0x254   :  { %1730 = vmatprep.mubr.bf16.mxu0 %v4408_v9  ;;  %1771 = vmatprep.mubr.bf16.mxu1 %v4408_v9 }
 0x255   :  { %1699 = vmatpush1.bf16.msra.mxu0 %v4104_v27  ;;  %1740 = vmatpush1.bf16.msra.mxu1 %v4106_v12 }
 0x256   :  { %1700 = vmatprep.subr.bf16.mxu0 %v4112_v22  ;;  %1741 = vmatprep.subr.bf16.mxu1 %v4114_v6 }
 0x259   :  { %1701 = vmatpush1.bf16.msra.mxu0 %v4116_v26  ;;  %1742 = vmatpush1.bf16.msra.mxu1 %v4118_v32 }
 0x25a   :  { %1702 = vmatprep.subr.bf16.mxu0 %v3839_v42  ;;  %1743 = vmatprep.subr.bf16.mxu1 %v3841_v43  ;;  %v1192_v42 = vunpack.c.l.bf16 %v3996_v10 }
 0x25d   :  { %1703 = vmatpush1.bf16.msra.mxu0 %v3848_v45  ;;  %1744 = vmatpush1.bf16.msra.mxu1 %v3850_v46 }
 0x25e   :  { %1704 = vmatprep.subr.bf16.mxu0 %v3854_v47  ;;  %1745 = vmatprep.subr.bf16.mxu1 %v3858_v48  ;;  %v1193_v47 = vunpack.c.h.bf16 %v3996_v10 }
 0x261   :  { %1705 = vmatpush1.bf16.msra.mxu0 %v3860_v49  ;;  %1746 = vmatpush1.bf16.msra.mxu1 %v3862_v50 }
 0x262   :  { %1706 = vmatprep.subr.bf16.mxu0 %v3866_v51  ;;  %1747 = vmatprep.subr.bf16.mxu1 %v3870_v52 }
 0x265   :  { %1707 = vmatpush1.bf16.msra.mxu0 %v3877_v54  ;;  %1748 = vmatpush1.bf16.msra.mxu1 %v3879_v55 }
 0x266   :  { %1708 = vmatprep.subr.bf16.mxu0 %v3881_v56  ;;  %1749 = vmatprep.subr.bf16.mxu1 %v3883_v57 }
 0x269   :  { %1709 = vmatpush1.bf16.msra.mxu0 %v3889_v58  ;;  %1750 = vmatpush1.bf16.msra.mxu1 %v3891_v59  ;;  %v1195_v58 = vunpack.c.h.bf16 %v3998_v11 }
 0x26a   :  { %1710 = vmatprep.subr.bf16.mxu0 %v3893_v60  ;;  %1751 = vmatprep.subr.bf16.mxu1 %v3895_v61  ;;  %v1194_v60 = vunpack.c.l.bf16 %v3998_v11 }
 0x26d   :  { %1711 = vmatpush1.bf16.msra.mxu0 %v3906_v63  ;;  %1752 = vmatpush1.bf16.msra.mxu1 %v3908_v1 }
 0x26e   :  { %1712 = vmatprep.subr.bf16.mxu0 %v3910_v2  ;;  %1753 = vmatprep.subr.bf16.mxu1 %v3912_v3 }
 0x271   :  { %1713 = vmatpush1.bf16.msra.mxu0 %v3918_v4  ;;  %1754 = vmatpush1.bf16.msra.mxu1 %v3920_v5 }
 0x272   :  { %2008 = vmatprep.subr.bf16.mxu0 %v4100_v17  ;;  %2049 = vmatprep.subr.bf16.mxu1 %v4102_v41 }
 0x313   :  { %v1422_v43 = vpop.f32.mrf.mxu0  ;;  %v1463_v45 = vpop.f32.mrf.mxu1 }
 0x314   :  { %v1470_v46 = vadd.f32 %v1422_v43, %v1192_v42  ;;  %v1472_v61 = vadd.f32 %v1463_v45, %v1194_v60  ;;  %v4209_v42 = vld [vmem:[#allocation7 + $0x40] ss:$16 sps:$4 sm:$0xff]   ;;  %v4211_v43 = vld [vmem:[#allocation7 + $0x48] ss:$16 sps:$4 sm:$0xff]   ;;  %v4215_v45 = vld [vmem:[#allocation7 + $0x24] ss:$16 sps:$4 sm:$0xff]  }
 0x315   :  { %v1424_v48 = vpop.f32.mrf.mxu0  ;;  %v1465_v49 = vpop.f32.mrf.mxu1 }
 0x316   :  { %v3225_v50 = vmul.f32 -1.442695, %v1470_v46  ;;  %v1471_v51 = vadd.f32 %v1424_v48, %v1193_v47  ;;  %v1473_v59 = vadd.f32 %v1465_v49, %v1195_v58  ;;  %v4217_v46 = vld [vmem:[#allocation7 + $0x2c] ss:$16 sps:$4 sm:$0xff]   ;;  %v4221_v47 = vld [vmem:[#allocation7 + $0x20] ss:$16 sps:$4 sm:$0xff]   ;;  %v1503_v58 = vunpack.c.h.bf16 %v4004_v28 }
 0x317   :  { %v1426_v52 = vpop.f32.mrf.mxu0  ;;  %v1467_v54 = vpop.f32.mrf.mxu1  ;;  %v4223_v48 = vld [vmem:[#allocation7 + $0x28] ss:$16 sps:$4 sm:$0xff]   ;;  %v4227_v49 = vld [vmem:[#allocation7 + $0x4] ss:$16 sps:$4 sm:$0xff]  }
 0x318   :  { %3616 = vpow2.f32 %v3225_v50  ;;  %v3226_v55 = vmul.f32 -1.442695, %v1471_v51  ;;  %v3227_v63 = vmul.f32 -1.442695, %v1473_v59  ;;  %v4229_v50 = vld [vmem:[#allocation7 + $0xc] ss:$16 sps:$4 sm:$0xff]   ;;  %v1502_v54 = vunpack.c.l.bf16 %v4004_v28 }
 0x319   :  { %v1427_v56 = vpop.f32.mrf.mxu0  ;;  %v1468_v57 = vpop.f32.mrf.mxu1  ;;  %v4233_v51 = vld [vmem:[#allocation7] ss:$16 sps:$4 sm:$0xff]   ;;  %v4235_v52 = vld [vmem:[#allocation7 + $0x8] ss:$16 sps:$4 sm:$0xff]  }
 0x31a   :  { %3618 = vpow2.f32 %v3226_v55 }
 0x31b   :  { %3620 = vtanh.f32 %v1472_v61 }
 0x31c   :  { %3622 = vpow2.f32 %v3227_v63 }
 0x325   :  { %v3617_v1 = vpop.eup %3616 }
 0x326   :  { %v1477_v2 = vadd.f32 1.0, %v3617_v1 }
 0x327   :  { %v3619_v3 = vpop.eup %3618 }
 0x328   :  { %3624 = vrcp.f32 %v1477_v2  ;;  %v1483_v4 = vadd.f32 1.0, %v3619_v3  ;;  %v3621_v5 = vpop.eup %3620 }
 0x329   :  { %v3623_v10 = vpop.eup %3622 }
 0x32a   :  { %3626 = vrcp.f32 %v1483_v4  ;;  %v1490_v21 = vadd.f32 1.0, %v3623_v10  ;;  %v1505_v10 = vunpack.c.h.bf16 %v4006_v29 }
 0x32c   :  { %3628 = vrcp.f32 %v1490_v21 }
 0x335   :  { %v3625_v15 = vpop.eup %3624 }
 0x336   :  { %v1494_v16 = vmul.f32 %v3625_v15, %v3621_v5 }
 0x337   :  { %v3627_v19 = vpop.eup %3626 }
 0x338   :  { %v1493_v35 = vmul.f32 %v3627_v19, %v4092_v37  ;;  %v4193_v37 = vld [vmem:[#allocation7 + $0x6c] ss:$16 sps:$4 sm:$0xff]  }
 0x339   :  { %v3629_v11 = vpop.eup %3628 }
 0x33a   :  { %v4155_v44 = vadd.f32 %v1494_v16, %v1493_v35  ;;  %v1504_v16 = vunpack.c.l.bf16 %v4006_v29 }
 0x33c   :  { %3630 = vtanh.f32 %v4155_v44 }
 0x349   :  { %v3631_v20 = vpop.eup %3630 }
 0x34a   :  { %v1497_v8 = vmul.f32 %v3631_v20, %v3629_v11 }
 0x34c   :  { %v1498_v33 = vpack.c.bf16 %v1497_v8, %v1497_v8 }
 0x34e   :  { %1499 = vst [vmem:[%s4395_s6 + $0x8] sm:$0xf] %v1498_v33  ;;  %1731 = vmatmul.mubr.bf16.vlgmr.msra.gmra.mxu0 %v1498_v33  ;;  %1772 = vmatmul.mubr.bf16.vlgmr.msra.gmra.mxu1 %v1498_v33 }
 0x34f   :  { %2009 = vmatpush1.bf16.msra.mxu0 %v4104_v27  ;;  %2050 = vmatpush1.bf16.msra.mxu1 %v4106_v12 }
 0x350   :  { %2010 = vmatprep.subr.bf16.mxu0 %v4112_v22  ;;  %2051 = vmatprep.subr.bf16.mxu1 %v4114_v6 }
 0x351   :  { %2040 = vmatprep.mubr.bf16.mxu0 %v4408_v9  ;;  %2081 = vmatprep.mubr.bf16.mxu1 %v4408_v9 }
 0x353   :  { %2011 = vmatpush1.bf16.msra.mxu0 %v4116_v26  ;;  %2052 = vmatpush1.bf16.msra.mxu1 %v4118_v32 }
 0x354   :  { %2012 = vmatprep.subr.bf16.mxu0 %v4169_v0  ;;  %2053 = vmatprep.subr.bf16.mxu1 %v4171_v18 }
 0x357   :  { %2013 = vmatpush1.bf16.msra.mxu0 %v4173_v13  ;;  %2054 = vmatpush1.bf16.msra.mxu1 %v4175_v24 }
 0x358   :  { %2014 = vmatprep.subr.bf16.mxu0 %v4181_v31  ;;  %2055 = vmatprep.subr.bf16.mxu1 %v4183_v53 }
 0x35b   :  { %2015 = vmatpush1.bf16.msra.mxu0 %v4185_v23  ;;  %2056 = vmatpush1.bf16.msra.mxu1 %v4187_v25 }
 0x35c   :  { %2016 = vmatprep.subr.bf16.mxu0 %v4191_v36  ;;  %2057 = vmatprep.subr.bf16.mxu1 %v4193_v37 }
 0x35f   :  { %2017 = vmatpush1.bf16.msra.mxu0 %v4197_v34  ;;  %2058 = vmatpush1.bf16.msra.mxu1 %v4199_v38 }
 0x360   :  { %2018 = vmatprep.subr.bf16.mxu0 %v4203_v39  ;;  %2059 = vmatprep.subr.bf16.mxu1 %v4205_v40 }
 0x363   :  { %2019 = vmatpush1.bf16.msra.mxu0 %v4209_v42  ;;  %2060 = vmatpush1.bf16.msra.mxu1 %v4211_v43 }
 0x364   :  { %2020 = vmatprep.subr.bf16.mxu0 %v4215_v45  ;;  %2061 = vmatprep.subr.bf16.mxu1 %v4217_v46 }
 0x367   :  { %2021 = vmatpush1.bf16.msra.mxu0 %v4221_v47  ;;  %2062 = vmatpush1.bf16.msra.mxu1 %v4223_v48 }
 0x368   :  { %2022 = vmatprep.subr.bf16.mxu0 %v4227_v49  ;;  %2063 = vmatprep.subr.bf16.mxu1 %v4229_v50 }
 0x36b   :  { %2023 = vmatpush1.bf16.msra.mxu0 %v4233_v51  ;;  %2064 = vmatpush1.bf16.msra.mxu1 %v4235_v52 }
 0x36c   :  { %2318 = vmatprep.subr.bf16.mxu0 %v4100_v17  ;;  %2359 = vmatprep.subr.bf16.mxu1 %v4102_v41 }
 0x40e   :  { %v1732_v55 = vpop.f32.mrf.mxu0  ;;  %v1773_v56 = vpop.f32.mrf.mxu1 }
 0x40f   :  { %v1780_v57 = vadd.f32 %v1732_v55, %v1502_v54  ;;  %v1782_v19 = vadd.f32 %v1773_v56, %v1504_v16 }
 0x410   :  { %v1734_v59 = vpop.f32.mrf.mxu0  ;;  %v1775_v60 = vpop.f32.mrf.mxu1 }
 0x411   :  { %v3260_v61 = vmul.f32 -1.442695, %v1780_v57  ;;  %v1781_v63 = vadd.f32 %v1734_v59, %v1503_v58  ;;  %v1783_v15 = vadd.f32 %v1775_v60, %v1505_v10 }
 0x412   :  { %v1736_v1 = vpop.f32.mrf.mxu0  ;;  %v1777_v2 = vpop.f32.mrf.mxu1 }
 0x413   :  { %3632 = vpow2.f32 %v3260_v61  ;;  %v3261_v3 = vmul.f32 -1.442695, %v1781_v63  ;;  %v3262_v21 = vmul.f32 -1.442695, %v1783_v15 }
 0x414   :  { %v1737_v4 = vpop.f32.mrf.mxu0  ;;  %v1778_v5 = vpop.f32.mrf.mxu1 }
 0x415   :  { %3634 = vpow2.f32 %v3261_v3  ;;  %v1813_v4 = vunpack.c.h.bf16 %v4012_v7 }
 0x416   :  { %3636 = vtanh.f32 %v1782_v19 }
 0x417   :  { %3638 = vpow2.f32 %v3262_v21 }
 0x420   :  { %v3633_v35 = vpop.eup %3632 }
 0x421   :  { %v1787_v28 = vadd.f32 1.0, %v3633_v35 }
 0x422   :  { %v3635_v11 = vpop.eup %3634 }
 0x423   :  { %3640 = vrcp.f32 %v1787_v28  ;;  %v1793_v20 = vadd.f32 1.0, %v3635_v11  ;;  %v3637_v8 = vpop.eup %3636 }
 0x424   :  { %v3639_v33 = vpop.eup %3638 }
 0x425   :  { %3642 = vrcp.f32 %v1793_v20  ;;  %v1800_v58 = vadd.f32 1.0, %v3639_v33 }
 0x427   :  { %3644 = vrcp.f32 %v1800_v58 }
 0x430   :  { %v3641_v54 = vpop.eup %3640 }
 0x431   :  { %v1804_v55 = vmul.f32 %v3641_v54, %v3637_v8 }
 0x432   :  { %v3643_v57 = vpop.eup %3642 }
 0x433   :  { %v1803_v59 = vmul.f32 %v3643_v57, %v4155_v44  ;;  %v1812_v44 = vunpack.c.l.bf16 %v4012_v7 }
 0x434   :  { %v3645_v29 = vpop.eup %3644 }
 0x435   :  { %v4248_v60 = vadd.f32 %v1804_v55, %v1803_v59 }
 0x437   :  { %3646 = vtanh.f32 %v4248_v60 }
 0x444   :  { %v3647_v56 = vpop.eup %3646 }
 0x445   :  { %v1807_v61 = vmul.f32 %v3647_v56, %v3645_v29 }
 0x447   :  { %v1808_v63 = vpack.c.bf16 %v1807_v61, %v1807_v61 }
 0x449   :  { %1809 = vst [vmem:[%s4395_s6 + $0xc] sm:$0xf] %v1808_v63  ;;  %2041 = vmatmul.mubr.bf16.vlgmr.msra.gmra.mxu0 %v1808_v63  ;;  %2082 = vmatmul.mubr.bf16.vlgmr.msra.gmra.mxu1 %v1808_v63 }
 0x44a   :  { %2319 = vmatpush1.bf16.msra.mxu0 %v4104_v27  ;;  %2360 = vmatpush1.bf16.msra.mxu1 %v4106_v12 }
 0x44b   :  { %2320 = vmatprep.subr.bf16.mxu0 %v4112_v22  ;;  %2361 = vmatprep.subr.bf16.mxu1 %v4114_v6 }
 0x44c   :  { %2350 = vmatprep.mubr.bf16.mxu0 %v4408_v9  ;;  %2391 = vmatprep.mubr.bf16.mxu1 %v4408_v9 }
 0x44e   :  { %2321 = vmatpush1.bf16.msra.mxu0 %v4116_v26  ;;  %2362 = vmatpush1.bf16.msra.mxu1 %v4118_v32 }
 0x44f   :  { %2322 = vmatprep.subr.bf16.mxu0 %v4169_v0  ;;  %2363 = vmatprep.subr.bf16.mxu1 %v4171_v18 }
 0x452   :  { %2323 = vmatpush1.bf16.msra.mxu0 %v4173_v13  ;;  %2364 = vmatpush1.bf16.msra.mxu1 %v4175_v24 }
 0x453   :  { %2324 = vmatprep.subr.bf16.mxu0 %v4181_v31  ;;  %2365 = vmatprep.subr.bf16.mxu1 %v4183_v53 }
 0x456   :  { %2325 = vmatpush1.bf16.msra.mxu0 %v4185_v23  ;;  %2366 = vmatpush1.bf16.msra.mxu1 %v4187_v25 }
 0x457   :  { %2326 = vmatprep.subr.bf16.mxu0 %v4191_v36  ;;  %2367 = vmatprep.subr.bf16.mxu1 %v4193_v37 }
 0x45a   :  { %2327 = vmatpush1.bf16.msra.mxu0 %v4197_v34  ;;  %2368 = vmatpush1.bf16.msra.mxu1 %v4199_v38 }
 0x45b   :  { %2328 = vmatprep.subr.bf16.mxu0 %v4203_v39  ;;  %2369 = vmatprep.subr.bf16.mxu1 %v4205_v40 }
 0x45e   :  { %2329 = vmatpush1.bf16.msra.mxu0 %v4209_v42  ;;  %2370 = vmatpush1.bf16.msra.mxu1 %v4211_v43 }
 0x45f   :  { %2330 = vmatprep.subr.bf16.mxu0 %v4215_v45  ;;  %2371 = vmatprep.subr.bf16.mxu1 %v4217_v46 }
 0x462   :  { %2331 = vmatpush1.bf16.msra.mxu0 %v4221_v47  ;;  %2372 = vmatpush1.bf16.msra.mxu1 %v4223_v48 }
 0x463   :  { %2332 = vmatprep.subr.bf16.mxu0 %v4227_v49  ;;  %2373 = vmatprep.subr.bf16.mxu1 %v4229_v50 }
 0x466   :  { %2333 = vmatpush1.bf16.msra.mxu0 %v4233_v51  ;;  %2374 = vmatpush1.bf16.msra.mxu1 %v4235_v52 }
 0x467   :  { %2628 = vmatprep.subr.bf16.mxu0 %v4100_v17  ;;  %2669 = vmatprep.subr.bf16.mxu1 %v4102_v41  ;;  %v4409_v17 = vld [vmem:[#allocation11_spill] sm:$0xff] }
 0x468   :  { %v1815_v41 = vunpack.c.h.bf16 %v4409_v17  ;;  %v1814_v8 = vunpack.c.l.bf16 %v4409_v17  ;;  %v4410_v17 = vld [vmem:[#allocation12_spill] sm:$0xff] }
 0x509   :  { %v2042_v1 = vpop.f32.mrf.mxu0  ;;  %v2083_v2 = vpop.f32.mrf.mxu1 }
 0x50a   :  { %v2090_v3 = vadd.f32 %v2042_v1, %v1812_v44  ;;  %v2092_v33 = vadd.f32 %v2083_v2, %v1814_v8  ;;  %v2124_v8 = vunpack.c.l.bf16 %v4410_v17 }
 0x50b   :  { %v2044_v5 = vpop.f32.mrf.mxu0  ;;  %v2085_v10 = vpop.f32.mrf.mxu1 }
 0x50c   :  { %v3295_v15 = vmul.f32 -1.442695, %v2090_v3  ;;  %v2091_v16 = vadd.f32 %v2044_v5, %v1813_v4  ;;  %v2093_v20 = vadd.f32 %v2085_v10, %v1815_v41  ;;  %v2125_v41 = vunpack.c.h.bf16 %v4410_v17 }
 0x50d   :  { %v2046_v19 = vpop.f32.mrf.mxu0  ;;  %v2087_v21 = vpop.f32.mrf.mxu1 }
 0x50e   :  { %3648 = vpow2.f32 %v3295_v15  ;;  %v3296_v35 = vmul.f32 -1.442695, %v2091_v16  ;;  %v3297_v54 = vmul.f32 -1.442695, %v2093_v20 }
 0x50f   :  { %v2047_v28 = vpop.f32.mrf.mxu0  ;;  %v2088_v11 = vpop.f32.mrf.mxu1 }
 0x510   :  { %3650 = vpow2.f32 %v3296_v35 }
 0x511   :  { %3652 = vtanh.f32 %v2092_v33 }
 0x512   :  { %3654 = vpow2.f32 %v3297_v54 }
 0x51b   :  { %v3649_v55 = vpop.eup %3648 }
 0x51c   :  { %v2097_v7 = vadd.f32 1.0, %v3649_v55 }
 0x51d   :  { %v3651_v57 = vpop.eup %3650 }
 0x51e   :  { %3656 = vrcp.f32 %v2097_v7  ;;  %v2103_v58 = vadd.f32 1.0, %v3651_v57  ;;  %v3653_v59 = vpop.eup %3652 }
 0x51f   :  { %v3655_v29 = vpop.eup %3654 }
 0x520   :  { %3658 = vrcp.f32 %v2103_v58  ;;  %v2110_v44 = vadd.f32 1.0, %v3655_v29 }
 0x522   :  { %3660 = vrcp.f32 %v2110_v44 }
 0x52b   :  { %v3657_v56 = vpop.eup %3656 }
 0x52c   :  { %v2114_v61 = vmul.f32 %v3657_v56, %v3653_v59 }
 0x52d   :  { %v3659_v63 = vpop.eup %3658 }
 0x52e   :  { %v2113_v1 = vmul.f32 %v3659_v63, %v4248_v60 }
 0x52f   :  { %v3661_v2 = vpop.eup %3660 }
 0x530   :  { %v4293_v3 = vadd.f32 %v2114_v61, %v2113_v1 }
 0x532   :  { %3662 = vtanh.f32 %v4293_v3 }
 0x53f   :  { %v3663_v4 = vpop.eup %3662 }
 0x540   :  { %v2117_v5 = vmul.f32 %v3663_v4, %v3661_v2 }
 0x542   :  { %v2118_v10 = vpack.c.bf16 %v2117_v5, %v2117_v5 }
 0x544   :  { %2119 = vst [vmem:[%s4395_s6 + $0x10] sm:$0xf] %v2118_v10  ;;  %2351 = vmatmul.mubr.bf16.vlgmr.msra.gmra.mxu0 %v2118_v10  ;;  %2392 = vmatmul.mubr.bf16.vlgmr.msra.gmra.mxu1 %v2118_v10 }
 0x545   :  { %2629 = vmatpush1.bf16.msra.mxu0 %v4104_v27  ;;  %2670 = vmatpush1.bf16.msra.mxu1 %v4106_v12  ;;  %v2122_v27 = vunpack.c.l.bf16 %v4022_v30 }
 0x546   :  { %2630 = vmatprep.subr.bf16.mxu0 %v4112_v22  ;;  %2671 = vmatprep.subr.bf16.mxu1 %v4114_v6 }
 0x547   :  { %2660 = vmatprep.mubr.bf16.mxu0 %v4408_v9  ;;  %2701 = vmatprep.mubr.bf16.mxu1 %v4408_v9 }
 0x549   :  { %2631 = vmatpush1.bf16.msra.mxu0 %v4116_v26  ;;  %2672 = vmatpush1.bf16.msra.mxu1 %v4118_v32  ;;  %v2123_v26 = vunpack.c.h.bf16 %v4022_v30 }
 0x54a   :  { %2632 = vmatprep.subr.bf16.mxu0 %v4169_v0  ;;  %2673 = vmatprep.subr.bf16.mxu1 %v4171_v18 }
 0x54d   :  { %2633 = vmatpush1.bf16.msra.mxu0 %v4173_v13  ;;  %2674 = vmatpush1.bf16.msra.mxu1 %v4175_v24 }
 0x54e   :  { %2634 = vmatprep.subr.bf16.mxu0 %v4181_v31  ;;  %2675 = vmatprep.subr.bf16.mxu1 %v4183_v53 }
 0x551   :  { %2635 = vmatpush1.bf16.msra.mxu0 %v4185_v23  ;;  %2676 = vmatpush1.bf16.msra.mxu1 %v4187_v25 }
 0x552   :  { %2636 = vmatprep.subr.bf16.mxu0 %v4191_v36  ;;  %2677 = vmatprep.subr.bf16.mxu1 %v4193_v37 }
 0x555   :  { %2637 = vmatpush1.bf16.msra.mxu0 %v4197_v34  ;;  %2678 = vmatpush1.bf16.msra.mxu1 %v4199_v38 }
 0x556   :  { %2638 = vmatprep.subr.bf16.mxu0 %v4203_v39  ;;  %2679 = vmatprep.subr.bf16.mxu1 %v4205_v40 }
 0x559   :  { %2639 = vmatpush1.bf16.msra.mxu0 %v4209_v42  ;;  %2680 = vmatpush1.bf16.msra.mxu1 %v4211_v43 }
 0x55a   :  { %2640 = vmatprep.subr.bf16.mxu0 %v4215_v45  ;;  %2681 = vmatprep.subr.bf16.mxu1 %v4217_v46 }
 0x55d   :  { %2641 = vmatpush1.bf16.msra.mxu0 %v4221_v47  ;;  %2682 = vmatpush1.bf16.msra.mxu1 %v4223_v48 }
 0x55e   :  { %2642 = vmatprep.subr.bf16.mxu0 %v4227_v49  ;;  %2683 = vmatprep.subr.bf16.mxu1 %v4229_v50 }
 0x561   :  { %2643 = vmatpush1.bf16.msra.mxu0 %v4233_v51  ;;  %2684 = vmatpush1.bf16.msra.mxu1 %v4235_v52 }
 0x604   :  { %v2352_v12 = vpop.f32.mrf.mxu0  ;;  %v2393_v22 = vpop.f32.mrf.mxu1 }
 0x605   :  { %v2400_v6 = vadd.f32 %v2352_v12, %v2122_v27  ;;  %v2402_v33 = vadd.f32 %v2393_v22, %v2124_v8  ;;  %v3577_v27 = vld [vmem:[#allocation7 + $0xec] ss:$16 sps:$4 sm:$0xff]   ;;  %v3572_v12 = vld [vmem:[#allocation7 + $0xe0] ss:$16 sps:$4 sm:$0xff]   ;;  %v3575_v22 = vld [vmem:[#allocation7 + $0xe8] ss:$16 sps:$4 sm:$0xff]   ;;  %v2742_v8 = vunpack.c.l.bf16 %v4038_v62 }
 0x606   :  { %v2354_v32 = vpop.f32.mrf.mxu0  ;;  %v2395_v60 = vpop.f32.mrf.mxu1  ;;  %2979 = vmatprep.subr.bf16.mxu1 %v3577_v27 }
 0x607   :  { %v3330_v15 = vmul.f32 -1.442695, %v2400_v6  ;;  %v2401_v16 = vadd.f32 %v2354_v32, %v2123_v26  ;;  %v2403_v20 = vadd.f32 %v2395_v60, %v2125_v41  ;;  %v3580_v6 = vld [vmem:[#allocation7 + $0xc4] ss:$16 sps:$4 sm:$0xff]   ;;  %v3583_v26 = vld [vmem:[#allocation7 + $0xcc] ss:$16 sps:$4 sm:$0xff]  }
 0x608   :  { %v2356_v19 = vpop.f32.mrf.mxu0  ;;  %v2397_v21 = vpop.f32.mrf.mxu1  ;;  %v3578_v32 = vld [vmem:[#allocation7 + $0xc0] ss:$16 sps:$4 sm:$0xff]   ;;  %v3581_v60 = vld [vmem:[#allocation7 + $0xc8] ss:$16 sps:$4 sm:$0xff]  }
 0x609   :  { %3664 = vpow2.f32 %v3330_v15  ;;  %v3331_v35 = vmul.f32 -1.442695, %v2401_v16  ;;  %v3332_v54 = vmul.f32 -1.442695, %v2403_v20 }
 0x60a   :  { %v2357_v28 = vpop.f32.mrf.mxu0  ;;  %v2398_v11 = vpop.f32.mrf.mxu1 }
 0x60b   :  { %3666 = vpow2.f32 %v3331_v35 }
 0x60c   :  { %3668 = vtanh.f32 %v2402_v33 }
 0x60d   :  { %3670 = vpow2.f32 %v3332_v54 }
 0x616   :  { %v3665_v55 = vpop.eup %3664 }
 0x617   :  { %v2407_v30 = vadd.f32 1.0, %v3665_v55 }
 0x618   :  { %v3667_v7 = vpop.eup %3666 }
 0x619   :  { %3672 = vrcp.f32 %v2407_v30  ;;  %v2413_v57 = vadd.f32 1.0, %v3667_v7  ;;  %v3669_v58 = vpop.eup %3668  ;;  %v2743_v30 = vunpack.c.h.bf16 %v4038_v62 }
 0x61a   :  { %v3671_v59 = vpop.eup %3670 }
 0x61b   :  { %3674 = vrcp.f32 %v2413_v57  ;;  %v2420_v63 = vadd.f32 1.0, %v3671_v59 }
 0x61d   :  { %3676 = vrcp.f32 %v2420_v63 }
 0x626   :  { %v3673_v29 = vpop.eup %3672 }
 0x627   :  { %v2424_v56 = vmul.f32 %v3673_v29, %v3669_v58 }
 0x628   :  { %v3675_v61 = vpop.eup %3674 }
 0x629   :  { %v2423_v44 = vmul.f32 %v3675_v61, %v4293_v3  ;;  %v3574_v3 = vld [vmem:[#allocation7 + $0xe4] ss:$16 sps:$4 sm:$0xff]  }
 0x62a   :  { %v3677_v2 = vpop.eup %3676  ;;  %2938 = vmatprep.subr.bf16.mxu0 %v3574_v3 }
 0x62b   :  { %v4336_v1 = vadd.f32 %v2424_v56, %v2423_v44 }
 0x62d   :  { %3678 = vtanh.f32 %v4336_v1 }
 0x63a   :  { %v3679_v4 = vpop.eup %3678 }
 0x63b   :  { %v2427_v5 = vmul.f32 %v3679_v4, %v3677_v2 }
 0x63d   :  { %v2428_v10 = vpack.c.bf16 %v2427_v5, %v2427_v5 }
 0x63f   :  { %2429 = vst [vmem:[%s4395_s6 + $0x14] sm:$0xf] %v2428_v10  ;;  %2661 = vmatmul.mubr.bf16.vlgmr.msra.gmra.mxu0 %v2428_v10  ;;  %2702 = vmatmul.mubr.bf16.vlgmr.msra.gmra.mxu1 %v2428_v10 }
 0x640   :  { %2970 = vmatprep.mubr.bf16.mxu0 %v4408_v9  ;;  %3011 = vmatprep.mubr.bf16.mxu1 %v4408_v9  ;;  %v2432_v9 = vunpack.c.l.bf16 %v4030_v14 }
 0x641   :  { %2939 = vmatpush1.bf16.msra.mxu0 %v3572_v12  ;;  %2980 = vmatpush1.bf16.msra.mxu1 %v3575_v22 }
 0x642   :  { %2940 = vmatprep.subr.bf16.mxu0 %v3580_v6  ;;  %2981 = vmatprep.subr.bf16.mxu1 %v3583_v26 }
 0x645   :  { %2941 = vmatpush1.bf16.msra.mxu0 %v3578_v32  ;;  %2982 = vmatpush1.bf16.msra.mxu1 %v3581_v60 }
 0x646   :  { %2942 = vmatprep.subr.bf16.mxu0 %v4169_v0  ;;  %2983 = vmatprep.subr.bf16.mxu1 %v4171_v18 }
 0x649   :  { %2943 = vmatpush1.bf16.msra.mxu0 %v4173_v13  ;;  %2984 = vmatpush1.bf16.msra.mxu1 %v4175_v24  ;;  %v2433_v24 = vunpack.c.h.bf16 %v4030_v14 }
 0x64a   :  { %2944 = vmatprep.subr.bf16.mxu0 %v4181_v31  ;;  %2985 = vmatprep.subr.bf16.mxu1 %v4183_v53 }
 0x64d   :  { %2945 = vmatpush1.bf16.msra.mxu0 %v4185_v23  ;;  %2986 = vmatpush1.bf16.msra.mxu1 %v4187_v25 }
 0x64e   :  { %2946 = vmatprep.subr.bf16.mxu0 %v4191_v36  ;;  %2987 = vmatprep.subr.bf16.mxu1 %v4193_v37 }
 0x651   :  { %2947 = vmatpush1.bf16.msra.mxu0 %v4197_v34  ;;  %2988 = vmatpush1.bf16.msra.mxu1 %v4199_v38 }
 0x652   :  { %2948 = vmatprep.subr.bf16.mxu0 %v4203_v39  ;;  %2989 = vmatprep.subr.bf16.mxu1 %v4205_v40  ;;  %v4411_v40 = vld [vmem:[#allocation13_spill] sm:$0xff] }
 0x655   :  { %2949 = vmatpush1.bf16.msra.mxu0 %v4209_v42  ;;  %2990 = vmatpush1.bf16.msra.mxu1 %v4211_v43  ;;  %v2435_v42 = vunpack.c.h.bf16 %v4411_v40 }
 0x656   :  { %2950 = vmatprep.subr.bf16.mxu0 %v4215_v45  ;;  %2991 = vmatprep.subr.bf16.mxu1 %v4217_v46  ;;  %v2434_v45 = vunpack.c.l.bf16 %v4411_v40 }
 0x659   :  { %2951 = vmatpush1.bf16.msra.mxu0 %v4221_v47  ;;  %2992 = vmatpush1.bf16.msra.mxu1 %v4223_v48 }
 0x65a   :  { %2952 = vmatprep.subr.bf16.mxu0 %v4227_v49  ;;  %2993 = vmatprep.subr.bf16.mxu1 %v4229_v50 }
 0x65d   :  { %2953 = vmatpush1.bf16.msra.mxu0 %v4233_v51  ;;  %2994 = vmatpush1.bf16.msra.mxu1 %v4235_v52 }
 0x6ff   :  { %v2662_v0 = vpop.f32.mrf.mxu0  ;;  %v2703_v18 = vpop.f32.mrf.mxu1 }
 0x700   :  { %v2710_v13 = vadd.f32 %v2662_v0, %v2432_v9  ;;  %v2712_v46 = vadd.f32 %v2703_v18, %v2434_v45 }
 0x701   :  { %v2664_v31 = vpop.f32.mrf.mxu0  ;;  %v2705_v53 = vpop.f32.mrf.mxu1 }
 0x702   :  { %v3365_v23 = vmul.f32 -1.442695, %v2710_v13  ;;  %v2711_v25 = vadd.f32 %v2664_v31, %v2433_v24  ;;  %v2713_v43 = vadd.f32 %v2705_v53, %v2435_v42 }
 0x703   :  { %v2666_v36 = vpop.f32.mrf.mxu0  ;;  %v2707_v37 = vpop.f32.mrf.mxu1 }
 0x704   :  { %3680 = vpow2.f32 %v3365_v23  ;;  %v3366_v34 = vmul.f32 -1.442695, %v2711_v25  ;;  %v3367_v47 = vmul.f32 -1.442695, %v2713_v43 }
 0x705   :  { %v2667_v38 = vpop.f32.mrf.mxu0  ;;  %v2708_v39 = vpop.f32.mrf.mxu1 }
 0x706   :  { %3682 = vpow2.f32 %v3366_v34 }
 0x707   :  { %3684 = vtanh.f32 %v2712_v46 }
 0x708   :  { %3686 = vpow2.f32 %v3367_v47 }
 0x711   :  { %v3681_v48 = vpop.eup %3680 }
 0x712   :  { %v2717_v14 = vadd.f32 1.0, %v3681_v48 }
 0x713   :  { %v3683_v49 = vpop.eup %3682 }
 0x714   :  { %3688 = vrcp.f32 %v2717_v14  ;;  %v2723_v50 = vadd.f32 1.0, %v3683_v49  ;;  %v3685_v51 = vpop.eup %3684 }
 0x715   :  { %v3687_v52 = vpop.eup %3686 }
 0x716   :  { %3690 = vrcp.f32 %v2723_v50  ;;  %v2730_v21 = vadd.f32 1.0, %v3687_v52 }
 0x718   :  { %3692 = vrcp.f32 %v2730_v21 }
 0x721   :  { %v3689_v15 = vpop.eup %3688 }
 0x722   :  { %v2734_v16 = vmul.f32 %v3689_v15, %v3685_v51 }
 0x723   :  { %v3691_v19 = vpop.eup %3690 }
 0x724   :  { %v2733_v35 = vmul.f32 %v3691_v19, %v4336_v1  ;;  %v4412_v1 = vld [vmem:[#allocation14_spill] sm:$0xff] }
 0x725   :  { %v3693_v11 = vpop.eup %3692  ;;  %v2745_v2 = vunpack.c.h.bf16 %v4412_v1  ;;  %v2744_v5 = vunpack.c.l.bf16 %v4412_v1 }
 0x726   :  { %v2735_v28 = vadd.f32 %v2734_v16, %v2733_v35 }
 0x728   :  { %3694 = vtanh.f32 %v2735_v28 }
 0x735   :  { %v3695_v17 = vpop.eup %3694 }
 0x736   :  { %v2737_v41 = vmul.f32 %v3695_v17, %v3693_v11 }
 0x738   :  { %v2738_v20 = vpack.c.bf16 %v2737_v41, %v2737_v41 }
 0x73a   :  { %2739 = vst [vmem:[%s4395_s6 + $0x18] sm:$0xf] %v2738_v20  ;;  %2971 = vmatmul.mubr.bf16.vlgmr.msra.gmra.mxu0 %v2738_v20  ;;  %3012 = vmatmul.mubr.bf16.vlgmr.msra.gmra.mxu1 %v2738_v20 }
 0x7fa   :  { %v2972_v33 = vpop.f32.mrf.mxu0  ;;  %v3013_v54 = vpop.f32.mrf.mxu1 }
 0x7fb   :  { %v3020_v55 = vadd.f32 %v2972_v33, %v2742_v8  ;;  %v3022_v10 = vadd.f32 %v3013_v54, %v2744_v5 }
 0x7fc   :  { %v2974_v7 = vpop.f32.mrf.mxu0  ;;  %v3015_v57 = vpop.f32.mrf.mxu1 }
 0x7fd   :  { %v3400_v58 = vmul.f32 -1.442695, %v3020_v55  ;;  %v3021_v59 = vadd.f32 %v2974_v7, %v2743_v30  ;;  %v3023_v4 = vadd.f32 %v3015_v57, %v2745_v2 }
 0x7fe   :  { %v2976_v29 = vpop.f32.mrf.mxu0  ;;  %v3017_v56 = vpop.f32.mrf.mxu1 }
 0x7ff   :  { %3696 = vpow2.f32 %v3400_v58  ;;  %v3401_v61 = vmul.f32 -1.442695, %v3021_v59  ;;  %v3402_v3 = vmul.f32 -1.442695, %v3023_v4 }
 0x800   :  { %v2977_v63 = vpop.f32.mrf.mxu0  ;;  %v3018_v44 = vpop.f32.mrf.mxu1 }
 0x801   :  { %3698 = vpow2.f32 %v3401_v61 }
 0x802   :  { %3700 = vtanh.f32 %v3022_v10 }
 0x803   :  { %3702 = vpow2.f32 %v3402_v3 }
 0x80c   :  { %v3697_v27 = vpop.eup %3696 }
 0x80d   :  { %v3027_v62 = vadd.f32 1.0, %v3697_v27 }
 0x80e   :  { %v3699_v12 = vpop.eup %3698 }
 0x80f   :  { %3704 = vrcp.f32 %v3027_v62  ;;  %v3033_v22 = vadd.f32 1.0, %v3699_v12  ;;  %v3701_v6 = vpop.eup %3700 }
 0x810   :  { %v3703_v26 = vpop.eup %3702 }
 0x811   :  { %3706 = vrcp.f32 %v3033_v22  ;;  %v3040_v0 = vadd.f32 1.0, %v3703_v26 }
 0x813   :  { %3708 = vrcp.f32 %v3040_v0 }
 0x81c   :  { %v3705_v32 = vpop.eup %3704 }
 0x81d   :  { %v3044_v60 = vmul.f32 %v3705_v32, %v3701_v6 }
 0x81e   :  { %v3707_v9 = vpop.eup %3706 }
 0x81f   :  { %v3043_v18 = vmul.f32 %v3707_v9, %v2735_v28 }
 0x820   :  { %v3709_v24 = vpop.eup %3708 }
 0x821   :  { %v3045_v13 = vadd.f32 %v3044_v60, %v3043_v18 }
 0x823   :  { %3710 = vtanh.f32 %v3045_v13  ;;  %3056 = vst [vmem:[%s4397_s8] sm:$0xff] %v3045_v13 }
 0x830   :  { %v3711_v31 = vpop.eup %3710 }
 0x831   :  { %v3047_v53 = vmul.f32 %v3711_v31, %v3709_v24 }
 0x833   :  { %v3048_v23 = vpack.c.bf16 %v3047_v53, %v3047_v53  ;;  %3055 = vst [vmem:[%s4396_s7] sm:$0xff] %v3047_v53 }
 0x835   :  { %3049 = vst [vmem:[%s4395_s6 + $0x1c] sm:$0xf] %v3048_v23 }
 0x836   :  { %3069 = vsyncpa [#allocation6], 1 }
 0x837   :  { %3070 = vsyncpa [#allocation8], 1 }

</bundles_post_ra>
